<compile_context>
chip_gen: v7x
topology: tpu7x:2x2x1
jax: 0.10.0
libtpu: 0.0.40
codegen_flags: <defaults>
</compile_context>

<pallas_src>
import numpy as np
import jax
import jax.numpy as jnp
from jax.experimental import pallas as pl
from jax.experimental.pallas import tpu as pltpu

# ---------------- problem constants (from the PyTorch module) ----------------
D = 2          # VDP system dimension
ZETA = 200     # hidden width
HL = 2         # -> exactly 3 Linear layers per MLP

# ---------------- padded tile sizes -------------------------------------------
DIN_PAD = 8      # first-layer fan-in padded to one sublane tile (covers d+2, d+3)
Z_PAD = 256      # zeta = 200 padded to a lane multiple (matches 256-wide MXU)
DOUT_PAD = 128   # d = 2 padded to the lane minimum
OUT_COLS = 16    # 5 outputs x d lanes packed into one output slab (+6 pad lanes)
_STACK_ROWS_PER_SAMPLE = 12  # 2 + 2 + 2 + 4 + 2 stacked MLP rows per sample


# ---------------- fused forward kernel ----------------------------------------
def _fused_forward_kernel(
    data_ref,                                       # (TM, 8) packed per-sample data
    fh_w1, fh_b1, fh_w2, fh_b2, fh_w3, fh_b3,       # F_h params (W2/W3 bf16)
    pp_w1, pp_b1, pp_w2, pp_b2, pp_w3, pp_b3,       # Phi_Pert_p_1 params
    pm_w1, pm_b1, pm_w2, pm_b2, pm_w3, pm_b3,       # Phi_Pert_m_1 params
    out_ref,                                        # (TM, 16) packed outputs
    stack_ref,                                      # VMEM scratch (4*TM, Z_PAD) f32
):
    M = data_ref.shape[0]   # batch tile size (static)

    data = data_ref[...]
    y0 = data[:, 0:2]
    ct, st = data[:, 2:3], data[:, 3:4]
    ct1, st1 = data[:, 4:5], data[:, 5:6]
    hh, ee = data[:, 6:7], data[:, 7:8]

    def phi_l1_pair(W1ref, B1ref, c, s, yv):
        # Linear(d+3 -> zeta) as rank-1 VPU broadcasts, feature order
        # (cos, sin, y, eps).  The y/eps terms are shared by the oscillatory and
        # the base (cos=1, sin=0) branch.
        W1 = W1ref[...]
        common = (B1ref[...] + yv[:, 0:1] * W1[2:3, :] + yv[:, 1:2] * W1[3:4, :]
                  + ee * W1[4:5, :])
        osc = common + c * W1[0:1, :] + s * W1[1:2, :]
        base = common + W1[0:1, :]
        return osc, base

    def fh_l1(W1ref, B1ref, yv):
        # Linear(d+2 -> zeta); feature order (y, h, eps).
        W1 = W1ref[...]
        return (B1ref[...] + yv[:, 0:1] * W1[0:1, :] + yv[:, 1:2] * W1[1:2, :]
                + hh * W1[2:3, :] + ee * W1[3:4, :])

    def tail(rows, W2ref, B2ref, W3ref, B3ref):
        # Tanh -> Linear(zeta,zeta) -> Tanh -> Linear(zeta,d) on the stacked slab.
        # Matmul operands in bf16 (native MXU dtype), f32 accumulation; tanh in f32
        # (chip-agnostic; a bf16 tanh is a further v6e/v7x-only EUP win).
        h1 = jnp.tanh(stack_ref[0:rows, :]).astype(jnp.bfloat16)
        h2 = jnp.tanh(
            jnp.dot(h1, W2ref[...], preferred_element_type=jnp.float32) + B2ref[...]
        ).astype(jnp.bfloat16)
        return jnp.dot(h2, W3ref[...], preferred_element_type=jnp.float32) + B3ref[...]

    def f_av(yv):
        # VDP averaged field: z_i = -1/8 * (y1^2 + y2^2 - 1) * y_i
        r2 = yv[:, 0:1] * yv[:, 0:1] + yv[:, 1:2] * yv[:, 1:2]
        return -0.125 * (r2 - 1.0) * yv

    # --- A) phi_m at y0: oscillatory + base stacked -> y0_bis (also y_m_p seed) ---
    osc, base = phi_l1_pair(pm_w1, pm_b1, ct, st, y0)
    stack_ref[0:M, :] = osc
    stack_ref[M:2 * M, :] = base
    outA = tail(2 * M, pm_w2, pm_b2, pm_w3, pm_b3)
    y0_bis = y0 + ee * (outA[0:M, 0:D] - outA[M:2 * M, 0:D])

    # --- B) phi_p at y0: oscillatory + base stacked -> y_phi (also y_p_m seed) ----
    osc, base = phi_l1_pair(pp_w1, pp_b1, ct, st, y0)
    stack_ref[0:M, :] = osc
    stack_ref[M:2 * M, :] = base
    outB = tail(2 * M, pp_w2, pp_b2, pp_w3, pp_b3)
    y_phi = y0 + ee * (outB[0:M, 0:D] - outB[M:2 * M, 0:D])

    # --- C) F_h at y0_bis and at y0, stacked into one pass -------------------------
    stack_ref[0:M, :] = fh_l1(fh_w1, fh_b1, y0_bis)
    stack_ref[M:2 * M, :] = fh_l1(fh_w1, fh_b1, y0)
    outC = tail(2 * M, fh_w2, fh_b2, fh_w3, fh_b3)
    x_F = y0_bis + hh * f_av(y0_bis) + hh * outC[0:M, 0:D]
    y_F = f_av(y0) + outC[M:2 * M, 0:D]

    # --- D) phi_p at (tau1, x_F) and (tau, y0_bis), with bases: 4-way stack --------
    osc1, base1 = phi_l1_pair(pp_w1, pp_b1, ct1, st1, x_F)
    osc2, base2 = phi_l1_pair(pp_w1, pp_b1, ct, st, y0_bis)
    stack_ref[0:M, :] = osc1
    stack_ref[M:2 * M, :] = base1
    stack_ref[2 * M:3 * M, :] = osc2
    stack_ref[3 * M:4 * M, :] = base2
    outD = tail(4 * M, pp_w2, pp_b2, pp_w3, pp_b3)
    y1_hat = x_F + ee * (outD[0:M, 0:D] - outD[M:2 * M, 0:D])
    y_m_p = y0_bis + ee * (outD[2 * M:3 * M, 0:D] - outD[3 * M:4 * M, 0:D])

    # --- E) phi_m at y_phi: oscillatory + base stacked -> y_p_m ---------------------
    osc, base = phi_l1_pair(pm_w1, pm_b1, ct, st, y_phi)
    stack_ref[0:M, :] = osc
    stack_ref[M:2 * M, :] = base
    outE = tail(2 * M, pm_w2, pm_b2, pm_w3, pm_b3)
    y_p_m = y_phi + ee * (outE[0:M, 0:D] - outE[M:2 * M, 0:D])

    # --- single packed output block (one output DMA per grid step) ------------------
    out_ref[:, 0:2] = y1_hat
    out_ref[:, 2:4] = y_p_m
    out_ref[:, 4:6] = y_m_p
    out_ref[:, 6:8] = y_F
    out_ref[:, 8:10] = y_phi
    out_ref[:, 10:16] = jnp.zeros((M, OUT_COLS - 10), jnp.float32)


# ---------------- deterministic parameter construction ------------------------
def _init_linear(key, fan_in, fan_out):
    # PyTorch nn.Linear-style uniform(-1/sqrt(fan_in), 1/sqrt(fan_in)) init.
    kw, kb = jax.random.split(key)
    bound = 1.0 / np.sqrt(fan_in)
    w = jax.random.uniform(kw, (fan_in, fan_out), jnp.float32, -bound, bound)
    b = jax.random.uniform(kb, (fan_out,), jnp.float32, -bound, bound)
    return w, b


def make_padded_mlp(key, din):
    """Linear(din,zeta)/Tanh/Linear(zeta,zeta)/Tanh/Linear(zeta,d), zero-padded to
    the fixed kernel tile sizes (padding is exact: unused rows/cols are zero and the
    padded output columns are sliced away in-kernel).  Stored in f32; the wrapper
    casts the two big matmul weights to bf16 for the MXU."""
    k1, k2, k3 = jax.random.split(key, 3)
    w1, b1 = _init_linear(k1, din, ZETA)
    w2, b2 = _init_linear(k2, ZETA, ZETA)
    w3, b3 = _init_linear(k3, ZETA, D)
    W1 = jnp.zeros((DIN_PAD, Z_PAD), jnp.float32).at[:din, :ZETA].set(w1)
    B1 = jnp.zeros((1, Z_PAD), jnp.float32).at[0, :ZETA].set(b1)
    W2 = jnp.zeros((Z_PAD, Z_PAD), jnp.float32).at[:ZETA, :ZETA].set(w2)
    B2 = jnp.zeros((1, Z_PAD), jnp.float32).at[0, :ZETA].set(b2)
    W3 = jnp.zeros((Z_PAD, DOUT_PAD), jnp.float32).at[:ZETA, :D].set(w3)
    B3 = jnp.zeros((1, DOUT_PAD), jnp.float32).at[0, :D].set(b3)
    return (W1, B1, W2, B2, W3, B3)


def _mxu_cast(P):
    """bf16 for the two big matmul operands (W2, W3); W1/biases stay f32 (they feed
    the rank-1 first layer / the f32 accumulator)."""
    W1, B1, W2, B2, W3, B3 = P
    return (W1, B1, W2.astype(jnp.bfloat16), B2, W3.astype(jnp.bfloat16), B3)


# ---------------- jitted forward wrapper (single fused pallas_call) -----------
@jax.jit
def nn_forward(params, y, t, h, eps):
    """Inputs match the PyTorch module: y (d,n), t/h/eps (1,n).
    Returns (y1_hat, y_p_m, y_m_p, y_F, y_phi), each of shape (d, n)."""
    p_F_h, p_phi_p, p_phi_m = params

    yT = y.T.astype(jnp.float32)   # (n, d)
    tT = t.T.astype(jnp.float32)   # (n, 1)
    hT = h.T.astype(jnp.float32)
    eT = eps.T.astype(jnp.float32)
    n = yT.shape[0]

    tau = tT / eT
    tau1 = (tT + hT) / eT
    # Packed per-sample data: [y0, y1, cos(tau), sin(tau), cos(tau1), sin(tau1), h, e]
    data = jnp.concatenate(
        [yT, jnp.cos(tau), jnp.sin(tau), jnp.cos(tau1), jnp.sin(tau1), hT, eT], axis=1)

    # Batch tiling: multiple of 8 (sublane); >= 2 grid steps as soon as n > 8 so the
    # "parallel" axis can use both v7x TensorCores; TM <= 256 keeps the 4-way stacked
    # activations + weights well inside the 32 MiB default scoped VMEM on all chips.
    n8 = ((n + 7) // 8) * 8
    if n8 <= 8:
        TM = 8
    else:
        TM = min(256, (((n8 // 2) + 7) // 8) * 8)
    npad = ((n + TM - 1) // TM) * TM
    grid = (npad // TM,)

    data = jnp.pad(data, ((0, npad - n), (0, 0)))

    w_shapes = [(DIN_PAD, Z_PAD), (1, Z_PAD), (Z_PAD, Z_PAD), (1, Z_PAD),
                (Z_PAD, DOUT_PAD), (1, DOUT_PAD)]
    weight_specs = [pl.BlockSpec(s, lambda i: (0, 0)) for s in w_shapes] * 3

    weight_bytes = 3 * (DIN_PAD * Z_PAD * 4 + Z_PAD * 4          # W1, B1 (f32)
                        + Z_PAD * Z_PAD * 2 + Z_PAD * 4          # W2 (bf16), B2
                        + Z_PAD * DOUT_PAD * 2 + DOUT_PAD * 4)   # W3 (bf16), B3
    cost = pl.CostEstimate(
        flops=npad * _STACK_ROWS_PER_SAMPLE * 2 * (Z_PAD * Z_PAD + Z_PAD * DOUT_PAD),
        transcendentals=npad * _STACK_ROWS_PER_SAMPLE * 2 * Z_PAD,
        bytes_accessed=npad * (8 + OUT_COLS) * 4 + weight_bytes,
    )

    out = pl.pallas_call(
        _fused_forward_kernel,
        grid=grid,
        out_shape=jax.ShapeDtypeStruct((npad, OUT_COLS), jnp.float32),
        in_specs=[pl.BlockSpec((TM, 8), lambda i: (i, 0))] + weight_specs,
        out_specs=pl.BlockSpec((TM, OUT_COLS), lambda i: (i, 0)),
        scratch_shapes=[pltpu.VMEM((4 * TM, Z_PAD), jnp.float32)],
        compiler_params=pltpu.CompilerParams(dimension_semantics=("parallel",)),
        cost_estimate=cost,
    )(data, *_mxu_cast(p_F_h), *_mxu_cast(p_phi_p), *_mxu_cast(p_phi_m))

    out = out[:n]
    return (out[:, 0:2].T, out[:, 2:4].T, out[:, 4:6].T, out[:, 6:8].T, out[:, 8:10].T)


# ---------------- pure-JAX reference (mirrors the PyTorch forward) ------------
def _ref_mlp(P, x, mm_dtype):
    W1, B1, W2, B2, W3, B3 = P
    din = x.shape[1]
    h1 = jnp.tanh(x @ W1[:din, :ZETA] + B1[0, :ZETA])
    h2 = jnp.tanh(jnp.dot(h1.astype(mm_dtype), W2[:ZETA, :ZETA].astype(mm_dtype),
                          preferred_element_type=jnp.float32) + B2[0, :ZETA])
    return jnp.dot(h2.astype(mm_dtype), W3[:ZETA, :D].astype(mm_dtype),
                   preferred_element_type=jnp.float32) + B3[0, :D]


def _ref_forward(params, y, t, h, eps, mm_dtype=jnp.float32):
    p_F_h, p_phi_p, p_phi_m = params
    yT, tT, hT, eT = (a.T.astype(jnp.float32) for a in (y, t, h, eps))
    tau, tau1 = tT / eT, (tT + hT) / eT
    ct, st, ct1, st1 = jnp.cos(tau), jnp.sin(tau), jnp.cos(tau1), jnp.sin(tau1)
    one, zero = jnp.ones_like(tT), jnp.zeros_like(tT)

    def f_av(yv):
        r2 = jnp.sum(yv * yv, axis=1, keepdims=True)
        return -0.125 * (r2 - 1.0) * yv

    def phi(P, c, s, yv):
        a = _ref_mlp(P, jnp.concatenate([c, s, yv, eT], axis=1), mm_dtype)
        a0 = _ref_mlp(P, jnp.concatenate([one, zero, yv, eT], axis=1), mm_dtype)
        return a - a0

    y0 = yT
    y0_bis = y0 + eT * phi(p_phi_m, ct, st, y0)
    x_F_h = _ref_mlp(p_F_h, jnp.concatenate([y0_bis, hT, eT], axis=1), mm_dtype)
    x_F = y0_bis + hT * f_av(y0_bis) + hT * x_F_h
    y1_hat = x_F + eT * phi(p_phi_p, ct1, st1, x_F)

    y_p_m = y0 + eT * phi(p_phi_p, ct, st, y0)
    y_p_m = y_p_m + eT * phi(p_phi_m, ct, st, y_p_m)

    y_m_p = y0 + eT * phi(p_phi_m, ct, st, y0)
    y_m_p = y_m_p + eT * phi(p_phi_p, ct, st, y_m_p)

    y_F_h = _ref_mlp(p_F_h, jnp.concatenate([yT, hT, eT], axis=1), mm_dtype)
    y_F = f_av(yT) + y_F_h

    y_phi = yT + eT * phi(p_phi_p, ct, st, yT)
    return (y1_hat.T, y_p_m.T, y_m_p.T, y_F.T, y_phi.T)


# ---------------------------------- main ---------------------------------------
if __name__ == "__main__":
    key = jax.random.PRNGKey(0)
    k_params, k_y, k_t, k_e = jax.random.split(key, 4)
    k_fh, k_pp, k_pm = jax.random.split(k_params, 3)

    # Parameters: F_h (d+2), Phi_Pert_p_1 (d+3), Phi_Pert_m_1 (d+3).
    # The F_eps network is omitted: its output is discarded (dead code) in the
    # original PyTorch forward, so dropping it does not change any output.
    params = (
        make_padded_mlp(k_fh, D + 2),
        make_padded_mlp(k_pp, D + 3),
        make_padded_mlp(k_pm, D + 3),
    )

    n = 8
    y = jax.random.normal(k_y, (D, n), jnp.float32)
    t = jax.random.uniform(k_t, (1, n), jnp.float32, 0.0, 1.0)
    h = jnp.full((1, n), 0.1, jnp.float32)
    eps = 0.05 + 0.1 * jax.random.uniform(k_e, (1, n), jnp.float32)

    outs = jax.block_until_ready(nn_forward(params, y, t, h, eps))
    assert all(o.shape == (D, n) for o in outs)
    assert all(bool(jnp.all(jnp.isfinite(o))) for o in outs)

    # (1) Structural check: reference using the SAME bf16-matmul numerics as the
    #     kernel -> must match tightly (proves the fused math is correct).
    refs_bf16 = jax.block_until_ready(_ref_forward(params, y, t, h, eps, jnp.bfloat16))
    for o, r in zip(outs, refs_bf16):
        np.testing.assert_allclose(np.asarray(o), np.asarray(r), rtol=1e-3, atol=1e-3)

    # (2) Accuracy check vs. the full-f32 reference: bounds the deliberate bf16-MXU
    #     numerics tradeoff (f32 accumulation keeps the error ~1e-3 absolute).
    refs_f32 = jax.block_until_ready(_ref_forward(params, y, t, h, eps, jnp.float32))
    for o, r in zip(outs, refs_f32):
        np.testing.assert_allclose(np.asarray(o), np.asarray(r), rtol=5e-3, atol=5e-3)

    print("KERNEL_OK")
</pallas_src>

<mosaic_0001>
module attributes {stable_mosaic.version = 11 : i64} {
  func.func @_fused_forward_kernel(%arg0: i32, %arg1: memref<8x8xf32, #tpu.memory_space<vmem>>, %arg2: memref<8x256xf32, #tpu.memory_space<vmem>>, %arg3: memref<1x256xf32, #tpu.memory_space<vmem>>, %arg4: memref<256x256xbf16, #tpu.memory_space<vmem>>, %arg5: memref<1x256xf32, #tpu.memory_space<vmem>>, %arg6: memref<256x128xbf16, #tpu.memory_space<vmem>>, %arg7: memref<1x128xf32, #tpu.memory_space<vmem>>, %arg8: memref<8x256xf32, #tpu.memory_space<vmem>>, %arg9: memref<1x256xf32, #tpu.memory_space<vmem>>, %arg10: memref<256x256xbf16, #tpu.memory_space<vmem>>, %arg11: memref<1x256xf32, #tpu.memory_space<vmem>>, %arg12: memref<256x128xbf16, #tpu.memory_space<vmem>>, %arg13: memref<1x128xf32, #tpu.memory_space<vmem>>, %arg14: memref<8x256xf32, #tpu.memory_space<vmem>>, %arg15: memref<1x256xf32, #tpu.memory_space<vmem>>, %arg16: memref<256x256xbf16, #tpu.memory_space<vmem>>, %arg17: memref<1x256xf32, #tpu.memory_space<vmem>>, %arg18: memref<256x128xbf16, #tpu.memory_space<vmem>>, %arg19: memref<1x128xf32, #tpu.memory_space<vmem>>, %arg20: memref<8x16xf32, #tpu.memory_space<vmem>>, %arg21: memref<32x256xf32, #tpu.memory_space<vmem>>) attributes {dimension_semantics = [#tpu.dimension_semantics<parallel>], iteration_bounds = array<i64: 1>, scalar_prefetch = 0 : i64, scratch_operands = 1 : i64, tpu.core_type = #tpu.core_type<tc>, window_params = [{transform_indices = @transform_0, window_bounds = array<i64: 8, 8>}, {pipeline_mode = #tpu.pipeline_mode<synchronous>, transform_indices = @transform_1, window_bounds = array<i64: 8, 256>}, {pipeline_mode = #tpu.pipeline_mode<synchronous>, transform_indices = @transform_2, window_bounds = array<i64: 1, 256>}, {pipeline_mode = #tpu.pipeline_mode<synchronous>, transform_indices = @transform_3, window_bounds = array<i64: 256, 256>}, {pipeline_mode = #tpu.pipeline_mode<synchronous>, transform_indices = @transform_4, window_bounds = array<i64: 1, 256>}, {pipeline_mode = #tpu.pipeline_mode<synchronous>, transform_indices = @transform_5, window_bounds = array<i64: 256, 128>}, {pipeline_mode = #tpu.pipeline_mode<synchronous>, transform_indices = @transform_6, window_bounds = array<i64: 1, 128>}, {pipeline_mode = #tpu.pipeline_mode<synchronous>, transform_indices = @transform_7, window_bounds = array<i64: 8, 256>}, {pipeline_mode = #tpu.pipeline_mode<synchronous>, transform_indices = @transform_8, window_bounds = array<i64: 1, 256>}, {pipeline_mode = #tpu.pipeline_mode<synchronous>, transform_indices = @transform_9, window_bounds = array<i64: 256, 256>}, {pipeline_mode = #tpu.pipeline_mode<synchronous>, transform_indices = @transform_10, window_bounds = array<i64: 1, 256>}, {pipeline_mode = #tpu.pipeline_mode<synchronous>, transform_indices = @transform_11, window_bounds = array<i64: 256, 128>}, {pipeline_mode = #tpu.pipeline_mode<synchronous>, transform_indices = @transform_12, window_bounds = array<i64: 1, 128>}, {pipeline_mode = #tpu.pipeline_mode<synchronous>, transform_indices = @transform_13, window_bounds = array<i64: 8, 256>}, {pipeline_mode = #tpu.pipeline_mode<synchronous>, transform_indices = @transform_14, window_bounds = array<i64: 1, 256>}, {pipeline_mode = #tpu.pipeline_mode<synchronous>, transform_indices = @transform_15, window_bounds = array<i64: 256, 256>}, {pipeline_mode = #tpu.pipeline_mode<synchronous>, transform_indices = @transform_16, window_bounds = array<i64: 1, 256>}, {pipeline_mode = #tpu.pipeline_mode<synchronous>, transform_indices = @transform_17, window_bounds = array<i64: 256, 128>}, {pipeline_mode = #tpu.pipeline_mode<synchronous>, transform_indices = @transform_18, window_bounds = array<i64: 1, 128>}, {transform_indices = @transform_19, window_bounds = array<i64: 8, 16>}]} {
    %c0 = arith.constant 0 : index
    %c0_0 = arith.constant 0 : index
    %0 = vector.load %arg1[%c0, %c0_0] : memref<8x8xf32, #tpu.memory_space<vmem>>, vector<8x8xf32>
    %1 = vector.extract_strided_slice %0 {offsets = [0, 0], sizes = [8, 2], strides = [1, 1]} : vector<8x8xf32> to vector<8x2xf32>
    %2 = vector.extract_strided_slice %0 {offsets = [0, 2], sizes = [8, 1], strides = [1, 1]} : vector<8x8xf32> to vector<8x1xf32>
    %3 = vector.extract_strided_slice %0 {offsets = [0, 3], sizes = [8, 1], strides = [1, 1]} : vector<8x8xf32> to vector<8x1xf32>
    %4 = vector.extract_strided_slice %0 {offsets = [0, 4], sizes = [8, 1], strides = [1, 1]} : vector<8x8xf32> to vector<8x1xf32>
    %5 = vector.extract_strided_slice %0 {offsets = [0, 5], sizes = [8, 1], strides = [1, 1]} : vector<8x8xf32> to vector<8x1xf32>
    %6 = vector.extract_strided_slice %0 {offsets = [0, 6], sizes = [8, 1], strides = [1, 1]} : vector<8x8xf32> to vector<8x1xf32>
    %7 = vector.extract_strided_slice %0 {offsets = [0, 7], sizes = [8, 1], strides = [1, 1]} : vector<8x8xf32> to vector<8x1xf32>
    %c0_1 = arith.constant 0 : index
    %c0_2 = arith.constant 0 : index
    %8 = vector.load %arg14[%c0_1, %c0_2] : memref<8x256xf32, #tpu.memory_space<vmem>>, vector<8x256xf32>
    %c0_3 = arith.constant 0 : index
    %c0_4 = arith.constant 0 : index
    %9 = vector.load %arg15[%c0_3, %c0_4] : memref<1x256xf32, #tpu.memory_space<vmem>>, vector<1x256xf32>
    %10 = vector.extract_strided_slice %1 {offsets = [0, 0], sizes = [8, 1], strides = [1, 1]} : vector<8x2xf32> to vector<8x1xf32>
    %11 = vector.extract_strided_slice %8 {offsets = [2, 0], sizes = [1, 256], strides = [1, 1]} : vector<8x256xf32> to vector<1x256xf32>
    %12 = vector.broadcast %10 : vector<8x1xf32> to vector<8x256xf32>
    %13 = vector.broadcast %11 : vector<1x256xf32> to vector<8x256xf32>
    %14 = arith.mulf %12, %13 : vector<8x256xf32>
    %15 = vector.broadcast %9 : vector<1x256xf32> to vector<8x256xf32>
    %16 = arith.addf %15, %14 : vector<8x256xf32>
    %17 = vector.extract_strided_slice %1 {offsets = [0, 1], sizes = [8, 1], strides = [1, 1]} : vector<8x2xf32> to vector<8x1xf32>
    %18 = vector.extract_strided_slice %8 {offsets = [3, 0], sizes = [1, 256], strides = [1, 1]} : vector<8x256xf32> to vector<1x256xf32>
    %19 = vector.broadcast %17 : vector<8x1xf32> to vector<8x256xf32>
    %20 = vector.broadcast %18 : vector<1x256xf32> to vector<8x256xf32>
    %21 = arith.mulf %19, %20 : vector<8x256xf32>
    %22 = arith.addf %16, %21 : vector<8x256xf32>
    %23 = vector.extract_strided_slice %8 {offsets = [4, 0], sizes = [1, 256], strides = [1, 1]} : vector<8x256xf32> to vector<1x256xf32>
    %24 = vector.broadcast %7 : vector<8x1xf32> to vector<8x256xf32>
    %25 = vector.broadcast %23 : vector<1x256xf32> to vector<8x256xf32>
    %26 = arith.mulf %24, %25 : vector<8x256xf32>
    %27 = arith.addf %22, %26 : vector<8x256xf32>
    %28 = vector.extract_strided_slice %8 {offsets = [0, 0], sizes = [1, 256], strides = [1, 1]} : vector<8x256xf32> to vector<1x256xf32>
    %29 = vector.broadcast %2 : vector<8x1xf32> to vector<8x256xf32>
    %30 = vector.broadcast %28 : vector<1x256xf32> to vector<8x256xf32>
    %31 = arith.mulf %29, %30 : vector<8x256xf32>
    %32 = arith.addf %27, %31 : vector<8x256xf32>
    %33 = vector.extract_strided_slice %8 {offsets = [1, 0], sizes = [1, 256], strides = [1, 1]} : vector<8x256xf32> to vector<1x256xf32>
    %34 = vector.broadcast %3 : vector<8x1xf32> to vector<8x256xf32>
    %35 = vector.broadcast %33 : vector<1x256xf32> to vector<8x256xf32>
    %36 = arith.mulf %34, %35 : vector<8x256xf32>
    %37 = arith.addf %32, %36 : vector<8x256xf32>
    %38 = vector.extract_strided_slice %8 {offsets = [0, 0], sizes = [1, 256], strides = [1, 1]} : vector<8x256xf32> to vector<1x256xf32>
    %39 = vector.broadcast %38 : vector<1x256xf32> to vector<8x256xf32>
    %40 = arith.addf %27, %39 : vector<8x256xf32>
    %c0_5 = arith.constant 0 : index
    %c0_6 = arith.constant 0 : index
    %41 = vector.load %arg21[%c0_5, %c0_6] : memref<32x256xf32, #tpu.memory_space<vmem>>, vector<8x256xf32>
    tpu.vector_store %arg21[%c0_5, %c0_6], %37 {strides = array<i32>} : memref<32x256xf32, #tpu.memory_space<vmem>>, vector<8x256xf32>,
    %c8 = arith.constant 8 : index
    %c0_7 = arith.constant 0 : index
    %42 = vector.load %arg21[%c8, %c0_7] : memref<32x256xf32, #tpu.memory_space<vmem>>, vector<8x256xf32>
    tpu.vector_store %arg21[%c8, %c0_7], %40 {strides = array<i32>} : memref<32x256xf32, #tpu.memory_space<vmem>>, vector<8x256xf32>,
    %c0_8 = arith.constant 0 : index
    %c0_9 = arith.constant 0 : index
    %43 = vector.load %arg21[%c0_8, %c0_9] : memref<32x256xf32, #tpu.memory_space<vmem>>, vector<16x256xf32>
    %44 = math.tanh %43 : vector<16x256xf32>
    %45 = arith.truncf %44 : vector<16x256xf32> to vector<16x256xbf16>
    %c0_10 = arith.constant 0 : index
    %c0_11 = arith.constant 0 : index
    %46 = vector.load %arg16[%c0_10, %c0_11] : memref<256x256xbf16, #tpu.memory_space<vmem>>, vector<256x256xbf16>
    %cst = arith.constant dense<0.000000e+00> : vector<16x256xf32>
    %47 = tpu.matmul %45, %46, %cst {dimension_numbers = #tpu.dot_dimension_numbers<[1], [0], [0], [1], [0, 0, 1, 1], [], []>} : vector<16x256xbf16>, vector<256x256xbf16>, vector<16x256xf32> -> vector<16x256xf32>
    %c0_12 = arith.constant 0 : index
    %c0_13 = arith.constant 0 : index
    %48 = vector.load %arg17[%c0_12, %c0_13] : memref<1x256xf32, #tpu.memory_space<vmem>>, vector<1x256xf32>
    %49 = vector.broadcast %48 : vector<1x256xf32> to vector<16x256xf32>
    %50 = arith.addf %47, %49 : vector<16x256xf32>
    %51 = math.tanh %50 : vector<16x256xf32>
    %52 = arith.truncf %51 : vector<16x256xf32> to vector<16x256xbf16>
    %c0_14 = arith.constant 0 : index
    %c0_15 = arith.constant 0 : index
    %53 = vector.load %arg18[%c0_14, %c0_15] : memref<256x128xbf16, #tpu.memory_space<vmem>>, vector<256x128xbf16>
    %cst_16 = arith.constant dense<0.000000e+00> : vector<16x128xf32>
    %54 = tpu.matmul %52, %53, %cst_16 {dimension_numbers = #tpu.dot_dimension_numbers<[1], [0], [0], [1], [0, 0, 1, 1], [], []>} : vector<16x256xbf16>, vector<256x128xbf16>, vector<16x128xf32> -> vector<16x128xf32>
    %c0_17 = arith.constant 0 : index
    %c0_18 = arith.constant 0 : index
    %55 = vector.load %arg19[%c0_17, %c0_18] : memref<1x128xf32, #tpu.memory_space<vmem>>, vector<1x128xf32>
    %56 = vector.broadcast %55 : vector<1x128xf32> to vector<16x128xf32>
    %57 = arith.addf %54, %56 : vector<16x128xf32>
    %58 = vector.extract_strided_slice %57 {offsets = [0, 0], sizes = [8, 2], strides = [1, 1]} : vector<16x128xf32> to vector<8x2xf32>
    %59 = vector.extract_strided_slice %57 {offsets = [8, 0], sizes = [8, 2], strides = [1, 1]} : vector<16x128xf32> to vector<8x2xf32>
    %60 = arith.subf %58, %59 : vector<8x2xf32>
    %61 = vector.broadcast %7 : vector<8x1xf32> to vector<8x2xf32>
    %62 = arith.mulf %61, %60 : vector<8x2xf32>
    %63 = arith.addf %1, %62 : vector<8x2xf32>
    %c0_19 = arith.constant 0 : index
    %c0_20 = arith.constant 0 : index
    %64 = vector.load %arg8[%c0_19, %c0_20] : memref<8x256xf32, #tpu.memory_space<vmem>>, vector<8x256xf32>
    %c0_21 = arith.constant 0 : index
    %c0_22 = arith.constant 0 : index
    %65 = vector.load %arg9[%c0_21, %c0_22] : memref<1x256xf32, #tpu.memory_space<vmem>>, vector<1x256xf32>
    %66 = vector.extract_strided_slice %1 {offsets = [0, 0], sizes = [8, 1], strides = [1, 1]} : vector<8x2xf32> to vector<8x1xf32>
    %67 = vector.extract_strided_slice %64 {offsets = [2, 0], sizes = [1, 256], strides = [1, 1]} : vector<8x256xf32> to vector<1x256xf32>
    %68 = vector.broadcast %66 : vector<8x1xf32> to vector<8x256xf32>
    %69 = vector.broadcast %67 : vector<1x256xf32> to vector<8x256xf32>
    %70 = arith.mulf %68, %69 : vector<8x256xf32>
    %71 = vector.broadcast %65 : vector<1x256xf32> to vector<8x256xf32>
    %72 = arith.addf %71, %70 : vector<8x256xf32>
    %73 = vector.extract_strided_slice %1 {offsets = [0, 1], sizes = [8, 1], strides = [1, 1]} : vector<8x2xf32> to vector<8x1xf32>
    %74 = vector.extract_strided_slice %64 {offsets = [3, 0], sizes = [1, 256], strides = [1, 1]} : vector<8x256xf32> to vector<1x256xf32>
    %75 = vector.broadcast %73 : vector<8x1xf32> to vector<8x256xf32>
    %76 = vector.broadcast %74 : vector<1x256xf32> to vector<8x256xf32>
    %77 = arith.mulf %75, %76 : vector<8x256xf32>
    %78 = arith.addf %72, %77 : vector<8x256xf32>
    %79 = vector.extract_strided_slice %64 {offsets = [4, 0], sizes = [1, 256], strides = [1, 1]} : vector<8x256xf32> to vector<1x256xf32>
    %80 = vector.broadcast %7 : vector<8x1xf32> to vector<8x256xf32>
    %81 = vector.broadcast %79 : vector<1x256xf32> to vector<8x256xf32>
    %82 = arith.mulf %80, %81 : vector<8x256xf32>
    %83 = arith.addf %78, %82 : vector<8x256xf32>
    %84 = vector.extract_strided_slice %64 {offsets = [0, 0], sizes = [1, 256], strides = [1, 1]} : vector<8x256xf32> to vector<1x256xf32>
    %85 = vector.broadcast %2 : vector<8x1xf32> to vector<8x256xf32>
    %86 = vector.broadcast %84 : vector<1x256xf32> to vector<8x256xf32>
    %87 = arith.mulf %85, %86 : vector<8x256xf32>
    %88 = arith.addf %83, %87 : vector<8x256xf32>
    %89 = vector.extract_strided_slice %64 {offsets = [1, 0], sizes = [1, 256], strides = [1, 1]} : vector<8x256xf32> to vector<1x256xf32>
    %90 = vector.broadcast %3 : vector<8x1xf32> to vector<8x256xf32>
    %91 = vector.broadcast %89 : vector<1x256xf32> to vector<8x256xf32>
    %92 = arith.mulf %90, %91 : vector<8x256xf32>
    %93 = arith.addf %88, %92 : vector<8x256xf32>
    %94 = vector.extract_strided_slice %64 {offsets = [0, 0], sizes = [1, 256], strides = [1, 1]} : vector<8x256xf32> to vector<1x256xf32>
    %95 = vector.broadcast %94 : vector<1x256xf32> to vector<8x256xf32>
    %96 = arith.addf %83, %95 : vector<8x256xf32>
    %c0_23 = arith.constant 0 : index
    %c0_24 = arith.constant 0 : index
    %97 = vector.load %arg21[%c0_23, %c0_24] : memref<32x256xf32, #tpu.memory_space<vmem>>, vector<8x256xf32>
    tpu.vector_store %arg21[%c0_23, %c0_24], %93 {strides = array<i32>} : memref<32x256xf32, #tpu.memory_space<vmem>>, vector<8x256xf32>,
    %c8_25 = arith.constant 8 : index
    %c0_26 = arith.constant 0 : index
    %98 = vector.load %arg21[%c8_25, %c0_26] : memref<32x256xf32, #tpu.memory_space<vmem>>, vector<8x256xf32>
    tpu.vector_store %arg21[%c8_25, %c0_26], %96 {strides = array<i32>} : memref<32x256xf32, #tpu.memory_space<vmem>>, vector<8x256xf32>,
    %c0_27 = arith.constant 0 : index
    %c0_28 = arith.constant 0 : index
    %99 = vector.load %arg21[%c0_27, %c0_28] : memref<32x256xf32, #tpu.memory_space<vmem>>, vector<16x256xf32>
    %100 = math.tanh %99 : vector<16x256xf32>
    %101 = arith.truncf %100 : vector<16x256xf32> to vector<16x256xbf16>
    %c0_29 = arith.constant 0 : index
    %c0_30 = arith.constant 0 : index
    %102 = vector.load %arg10[%c0_29, %c0_30] : memref<256x256xbf16, #tpu.memory_space<vmem>>, vector<256x256xbf16>
    %cst_31 = arith.constant dense<0.000000e+00> : vector<16x256xf32>
    %103 = tpu.matmul %101, %102, %cst_31 {dimension_numbers = #tpu.dot_dimension_numbers<[1], [0], [0], [1], [0, 0, 1, 1], [], []>} : vector<16x256xbf16>, vector<256x256xbf16>, vector<16x256xf32> -> vector<16x256xf32>
    %c0_32 = arith.constant 0 : index
    %c0_33 = arith.constant 0 : index
    %104 = vector.load %arg11[%c0_32, %c0_33] : memref<1x256xf32, #tpu.memory_space<vmem>>, vector<1x256xf32>
    %105 = vector.broadcast %104 : vector<1x256xf32> to vector<16x256xf32>
    %106 = arith.addf %103, %105 : vector<16x256xf32>
    %107 = math.tanh %106 : vector<16x256xf32>
    %108 = arith.truncf %107 : vector<16x256xf32> to vector<16x256xbf16>
    %c0_34 = arith.constant 0 : index
    %c0_35 = arith.constant 0 : index
    %109 = vector.load %arg12[%c0_34, %c0_35] : memref<256x128xbf16, #tpu.memory_space<vmem>>, vector<256x128xbf16>
    %cst_36 = arith.constant dense<0.000000e+00> : vector<16x128xf32>
    %110 = tpu.matmul %108, %109, %cst_36 {dimension_numbers = #tpu.dot_dimension_numbers<[1], [0], [0], [1], [0, 0, 1, 1], [], []>} : vector<16x256xbf16>, vector<256x128xbf16>, vector<16x128xf32> -> vector<16x128xf32>
    %c0_37 = arith.constant 0 : index
    %c0_38 = arith.constant 0 : index
    %111 = vector.load %arg13[%c0_37, %c0_38] : memref<1x128xf32, #tpu.memory_space<vmem>>, vector<1x128xf32>
    %112 = vector.broadcast %111 : vector<1x128xf32> to vector<16x128xf32>
    %113 = arith.addf %110, %112 : vector<16x128xf32>
    %114 = vector.extract_strided_slice %113 {offsets = [0, 0], sizes = [8, 2], strides = [1, 1]} : vector<16x128xf32> to vector<8x2xf32>
    %115 = vector.extract_strided_slice %113 {offsets = [8, 0], sizes = [8, 2], strides = [1, 1]} : vector<16x128xf32> to vector<8x2xf32>
    %116 = arith.subf %114, %115 : vector<8x2xf32>
    %117 = vector.broadcast %7 : vector<8x1xf32> to vector<8x2xf32>
    %118 = arith.mulf %117, %116 : vector<8x2xf32>
    %119 = arith.addf %1, %118 : vector<8x2xf32>
    %c0_39 = arith.constant 0 : index
    %c0_40 = arith.constant 0 : index
    %120 = vector.load %arg2[%c0_39, %c0_40] : memref<8x256xf32, #tpu.memory_space<vmem>>, vector<8x256xf32>
    %c0_41 = arith.constant 0 : index
    %c0_42 = arith.constant 0 : index
    %121 = vector.load %arg3[%c0_41, %c0_42] : memref<1x256xf32, #tpu.memory_space<vmem>>, vector<1x256xf32>
    %122 = vector.extract_strided_slice %63 {offsets = [0, 0], sizes = [8, 1], strides = [1, 1]} : vector<8x2xf32> to vector<8x1xf32>
    %123 = vector.extract_strided_slice %120 {offsets = [0, 0], sizes = [1, 256], strides = [1, 1]} : vector<8x256xf32> to vector<1x256xf32>
    %124 = vector.broadcast %122 : vector<8x1xf32> to vector<8x256xf32>
    %125 = vector.broadcast %123 : vector<1x256xf32> to vector<8x256xf32>
    %126 = arith.mulf %124, %125 : vector<8x256xf32>
    %127 = vector.broadcast %121 : vector<1x256xf32> to vector<8x256xf32>
    %128 = arith.addf %127, %126 : vector<8x256xf32>
    %129 = vector.extract_strided_slice %63 {offsets = [0, 1], sizes = [8, 1], strides = [1, 1]} : vector<8x2xf32> to vector<8x1xf32>
    %130 = vector.extract_strided_slice %120 {offsets = [1, 0], sizes = [1, 256], strides = [1, 1]} : vector<8x256xf32> to vector<1x256xf32>
    %131 = vector.broadcast %129 : vector<8x1xf32> to vector<8x256xf32>
    %132 = vector.broadcast %130 : vector<1x256xf32> to vector<8x256xf32>
    %133 = arith.mulf %131, %132 : vector<8x256xf32>
    %134 = arith.addf %128, %133 : vector<8x256xf32>
    %135 = vector.extract_strided_slice %120 {offsets = [2, 0], sizes = [1, 256], strides = [1, 1]} : vector<8x256xf32> to vector<1x256xf32>
    %136 = vector.broadcast %6 : vector<8x1xf32> to vector<8x256xf32>
    %137 = vector.broadcast %135 : vector<1x256xf32> to vector<8x256xf32>
    %138 = arith.mulf %136, %137 : vector<8x256xf32>
    %139 = arith.addf %134, %138 : vector<8x256xf32>
    %140 = vector.extract_strided_slice %120 {offsets = [3, 0], sizes = [1, 256], strides = [1, 1]} : vector<8x256xf32> to vector<1x256xf32>
    %141 = vector.broadcast %7 : vector<8x1xf32> to vector<8x256xf32>
    %142 = vector.broadcast %140 : vector<1x256xf32> to vector<8x256xf32>
    %143 = arith.mulf %141, %142 : vector<8x256xf32>
    %144 = arith.addf %139, %143 : vector<8x256xf32>
    %c0_43 = arith.constant 0 : index
    %c0_44 = arith.constant 0 : index
    %145 = vector.load %arg21[%c0_43, %c0_44] : memref<32x256xf32, #tpu.memory_space<vmem>>, vector<8x256xf32>
    tpu.vector_store %arg21[%c0_43, %c0_44], %144 {strides = array<i32>} : memref<32x256xf32, #tpu.memory_space<vmem>>, vector<8x256xf32>,
    %c0_45 = arith.constant 0 : index
    %c0_46 = arith.constant 0 : index
    %146 = vector.load %arg2[%c0_45, %c0_46] : memref<8x256xf32, #tpu.memory_space<vmem>>, vector<8x256xf32>
    %c0_47 = arith.constant 0 : index
    %c0_48 = arith.constant 0 : index
    %147 = vector.load %arg3[%c0_47, %c0_48] : memref<1x256xf32, #tpu.memory_space<vmem>>, vector<1x256xf32>
    %148 = vector.extract_strided_slice %1 {offsets = [0, 0], sizes = [8, 1], strides = [1, 1]} : vector<8x2xf32> to vector<8x1xf32>
    %149 = vector.extract_strided_slice %146 {offsets = [0, 0], sizes = [1, 256], strides = [1, 1]} : vector<8x256xf32> to vector<1x256xf32>
    %150 = vector.broadcast %148 : vector<8x1xf32> to vector<8x256xf32>
    %151 = vector.broadcast %149 : vector<1x256xf32> to vector<8x256xf32>
    %152 = arith.mulf %150, %151 : vector<8x256xf32>
    %153 = vector.broadcast %147 : vector<1x256xf32> to vector<8x256xf32>
    %154 = arith.addf %153, %152 : vector<8x256xf32>
    %155 = vector.extract_strided_slice %1 {offsets = [0, 1], sizes = [8, 1], strides = [1, 1]} : vector<8x2xf32> to vector<8x1xf32>
    %156 = vector.extract_strided_slice %146 {offsets = [1, 0], sizes = [1, 256], strides = [1, 1]} : vector<8x256xf32> to vector<1x256xf32>
    %157 = vector.broadcast %155 : vector<8x1xf32> to vector<8x256xf32>
    %158 = vector.broadcast %156 : vector<1x256xf32> to vector<8x256xf32>
    %159 = arith.mulf %157, %158 : vector<8x256xf32>
    %160 = arith.addf %154, %159 : vector<8x256xf32>
    %161 = vector.extract_strided_slice %146 {offsets = [2, 0], sizes = [1, 256], strides = [1, 1]} : vector<8x256xf32> to vector<1x256xf32>
    %162 = vector.broadcast %6 : vector<8x1xf32> to vector<8x256xf32>
    %163 = vector.broadcast %161 : vector<1x256xf32> to vector<8x256xf32>
    %164 = arith.mulf %162, %163 : vector<8x256xf32>
    %165 = arith.addf %160, %164 : vector<8x256xf32>
    %166 = vector.extract_strided_slice %146 {offsets = [3, 0], sizes = [1, 256], strides = [1, 1]} : vector<8x256xf32> to vector<1x256xf32>
    %167 = vector.broadcast %7 : vector<8x1xf32> to vector<8x256xf32>
    %168 = vector.broadcast %166 : vector<1x256xf32> to vector<8x256xf32>
    %169 = arith.mulf %167, %168 : vector<8x256xf32>
    %170 = arith.addf %165, %169 : vector<8x256xf32>
    %c8_49 = arith.constant 8 : index
    %c0_50 = arith.constant 0 : index
    %171 = vector.load %arg21[%c8_49, %c0_50] : memref<32x256xf32, #tpu.memory_space<vmem>>, vector<8x256xf32>
    tpu.vector_store %arg21[%c8_49, %c0_50], %170 {strides = array<i32>} : memref<32x256xf32, #tpu.memory_space<vmem>>, vector<8x256xf32>,
    %c0_51 = arith.constant 0 : index
    %c0_52 = arith.constant 0 : index
    %172 = vector.load %arg21[%c0_51, %c0_52] : memref<32x256xf32, #tpu.memory_space<vmem>>, vector<16x256xf32>
    %173 = math.tanh %172 : vector<16x256xf32>
    %174 = arith.truncf %173 : vector<16x256xf32> to vector<16x256xbf16>
    %c0_53 = arith.constant 0 : index
    %c0_54 = arith.constant 0 : index
    %175 = vector.load %arg4[%c0_53, %c0_54] : memref<256x256xbf16, #tpu.memory_space<vmem>>, vector<256x256xbf16>
    %cst_55 = arith.constant dense<0.000000e+00> : vector<16x256xf32>
    %176 = tpu.matmul %174, %175, %cst_55 {dimension_numbers = #tpu.dot_dimension_numbers<[1], [0], [0], [1], [0, 0, 1, 1], [], []>} : vector<16x256xbf16>, vector<256x256xbf16>, vector<16x256xf32> -> vector<16x256xf32>
    %c0_56 = arith.constant 0 : index
    %c0_57 = arith.constant 0 : index
    %177 = vector.load %arg5[%c0_56, %c0_57] : memref<1x256xf32, #tpu.memory_space<vmem>>, vector<1x256xf32>
    %178 = vector.broadcast %177 : vector<1x256xf32> to vector<16x256xf32>
    %179 = arith.addf %176, %178 : vector<16x256xf32>
    %180 = math.tanh %179 : vector<16x256xf32>
    %181 = arith.truncf %180 : vector<16x256xf32> to vector<16x256xbf16>
    %c0_58 = arith.constant 0 : index
    %c0_59 = arith.constant 0 : index
    %182 = vector.load %arg6[%c0_58, %c0_59] : memref<256x128xbf16, #tpu.memory_space<vmem>>, vector<256x128xbf16>
    %cst_60 = arith.constant dense<0.000000e+00> : vector<16x128xf32>
    %183 = tpu.matmul %181, %182, %cst_60 {dimension_numbers = #tpu.dot_dimension_numbers<[1], [0], [0], [1], [0, 0, 1, 1], [], []>} : vector<16x256xbf16>, vector<256x128xbf16>, vector<16x128xf32> -> vector<16x128xf32>
    %c0_61 = arith.constant 0 : index
    %c0_62 = arith.constant 0 : index
    %184 = vector.load %arg7[%c0_61, %c0_62] : memref<1x128xf32, #tpu.memory_space<vmem>>, vector<1x128xf32>
    %185 = vector.broadcast %184 : vector<1x128xf32> to vector<16x128xf32>
    %186 = arith.addf %183, %185 : vector<16x128xf32>
    %187 = vector.extract_strided_slice %63 {offsets = [0, 0], sizes = [8, 1], strides = [1, 1]} : vector<8x2xf32> to vector<8x1xf32>
    %188 = vector.extract_strided_slice %63 {offsets = [0, 0], sizes = [8, 1], strides = [1, 1]} : vector<8x2xf32> to vector<8x1xf32>
    %189 = arith.mulf %187, %188 : vector<8x1xf32>
    %190 = vector.extract_strided_slice %63 {offsets = [0, 1], sizes = [8, 1], strides = [1, 1]} : vector<8x2xf32> to vector<8x1xf32>
    %191 = vector.extract_strided_slice %63 {offsets = [0, 1], sizes = [8, 1], strides = [1, 1]} : vector<8x2xf32> to vector<8x1xf32>
    %192 = arith.mulf %190, %191 : vector<8x1xf32>
    %193 = arith.addf %189, %192 : vector<8x1xf32>
    %cst_63 = arith.constant 1.000000e+00 : f32
    %194 = vector.broadcast %cst_63 : f32 to vector<8x1xf32>
    %195 = arith.subf %193, %194 : vector<8x1xf32>
    %cst_64 = arith.constant -1.250000e-01 : f32
    %196 = vector.broadcast %cst_64 : f32 to vector<8x1xf32>
    %197 = arith.mulf %196, %195 : vector<8x1xf32>
    %198 = vector.broadcast %197 : vector<8x1xf32> to vector<8x2xf32>
    %199 = arith.mulf %198, %63 : vector<8x2xf32>
    %200 = vector.broadcast %6 : vector<8x1xf32> to vector<8x2xf32>
    %201 = arith.mulf %200, %199 : vector<8x2xf32>
    %202 = arith.addf %63, %201 : vector<8x2xf32>
    %203 = vector.extract_strided_slice %186 {offsets = [0, 0], sizes = [8, 2], strides = [1, 1]} : vector<16x128xf32> to vector<8x2xf32>
    %204 = vector.broadcast %6 : vector<8x1xf32> to vector<8x2xf32>
    %205 = arith.mulf %204, %203 : vector<8x2xf32>
    %206 = arith.addf %202, %205 : vector<8x2xf32>
    %207 = vector.extract_strided_slice %1 {offsets = [0, 0], sizes = [8, 1], strides = [1, 1]} : vector<8x2xf32> to vector<8x1xf32>
    %208 = vector.extract_strided_slice %1 {offsets = [0, 0], sizes = [8, 1], strides = [1, 1]} : vector<8x2xf32> to vector<8x1xf32>
    %209 = arith.mulf %207, %208 : vector<8x1xf32>
    %210 = vector.extract_strided_slice %1 {offsets = [0, 1], sizes = [8, 1], strides = [1, 1]} : vector<8x2xf32> to vector<8x1xf32>
    %211 = vector.extract_strided_slice %1 {offsets = [0, 1], sizes = [8, 1], strides = [1, 1]} : vector<8x2xf32> to vector<8x1xf32>
    %212 = arith.mulf %210, %211 : vector<8x1xf32>
    %213 = arith.addf %209, %212 : vector<8x1xf32>
    %cst_65 = arith.constant 1.000000e+00 : f32
    %214 = vector.broadcast %cst_65 : f32 to vector<8x1xf32>
    %215 = arith.subf %213, %214 : vector<8x1xf32>
    %cst_66 = arith.constant -1.250000e-01 : f32
    %216 = vector.broadcast %cst_66 : f32 to vector<8x1xf32>
    %217 = arith.mulf %216, %215 : vector<8x1xf32>
    %218 = vector.broadcast %217 : vector<8x1xf32> to vector<8x2xf32>
    %219 = arith.mulf %218, %1 : vector<8x2xf32>
    %220 = vector.extract_strided_slice %186 {offsets = [8, 0], sizes = [8, 2], strides = [1, 1]} : vector<16x128xf32> to vector<8x2xf32>
    %221 = arith.addf %219, %220 : vector<8x2xf32>
    %c0_67 = arith.constant 0 : index
    %c0_68 = arith.constant 0 : index
    %222 = vector.load %arg8[%c0_67, %c0_68] : memref<8x256xf32, #tpu.memory_space<vmem>>, vector<8x256xf32>
    %c0_69 = arith.constant 0 : index
    %c0_70 = arith.constant 0 : index
    %223 = vector.load %arg9[%c0_69, %c0_70] : memref<1x256xf32, #tpu.memory_space<vmem>>, vector<1x256xf32>
    %224 = vector.extract_strided_slice %206 {offsets = [0, 0], sizes = [8, 1], strides = [1, 1]} : vector<8x2xf32> to vector<8x1xf32>
    %225 = vector.extract_strided_slice %222 {offsets = [2, 0], sizes = [1, 256], strides = [1, 1]} : vector<8x256xf32> to vector<1x256xf32>
    %226 = vector.broadcast %224 : vector<8x1xf32> to vector<8x256xf32>
    %227 = vector.broadcast %225 : vector<1x256xf32> to vector<8x256xf32>
    %228 = arith.mulf %226, %227 : vector<8x256xf32>
    %229 = vector.broadcast %223 : vector<1x256xf32> to vector<8x256xf32>
    %230 = arith.addf %229, %228 : vector<8x256xf32>
    %231 = vector.extract_strided_slice %206 {offsets = [0, 1], sizes = [8, 1], strides = [1, 1]} : vector<8x2xf32> to vector<8x1xf32>
    %232 = vector.extract_strided_slice %222 {offsets = [3, 0], sizes = [1, 256], strides = [1, 1]} : vector<8x256xf32> to vector<1x256xf32>
    %233 = vector.broadcast %231 : vector<8x1xf32> to vector<8x256xf32>
    %234 = vector.broadcast %232 : vector<1x256xf32> to vector<8x256xf32>
    %235 = arith.mulf %233, %234 : vector<8x256xf32>
    %236 = arith.addf %230, %235 : vector<8x256xf32>
    %237 = vector.extract_strided_slice %222 {offsets = [4, 0], sizes = [1, 256], strides = [1, 1]} : vector<8x256xf32> to vector<1x256xf32>
    %238 = vector.broadcast %7 : vector<8x1xf32> to vector<8x256xf32>
    %239 = vector.broadcast %237 : vector<1x256xf32> to vector<8x256xf32>
    %240 = arith.mulf %238, %239 : vector<8x256xf32>
    %241 = arith.addf %236, %240 : vector<8x256xf32>
    %242 = vector.extract_strided_slice %222 {offsets = [0, 0], sizes = [1, 256], strides = [1, 1]} : vector<8x256xf32> to vector<1x256xf32>
    %243 = vector.broadcast %4 : vector<8x1xf32> to vector<8x256xf32>
    %244 = vector.broadcast %242 : vector<1x256xf32> to vector<8x256xf32>
    %245 = arith.mulf %243, %244 : vector<8x256xf32>
    %246 = arith.addf %241, %245 : vector<8x256xf32>
    %247 = vector.extract_strided_slice %222 {offsets = [1, 0], sizes = [1, 256], strides = [1, 1]} : vector<8x256xf32> to vector<1x256xf32>
    %248 = vector.broadcast %5 : vector<8x1xf32> to vector<8x256xf32>
    %249 = vector.broadcast %247 : vector<1x256xf32> to vector<8x256xf32>
    %250 = arith.mulf %248, %249 : vector<8x256xf32>
    %251 = arith.addf %246, %250 : vector<8x256xf32>
    %252 = vector.extract_strided_slice %222 {offsets = [0, 0], sizes = [1, 256], strides = [1, 1]} : vector<8x256xf32> to vector<1x256xf32>
    %253 = vector.broadcast %252 : vector<1x256xf32> to vector<8x256xf32>
    %254 = arith.addf %241, %253 : vector<8x256xf32>
    %c0_71 = arith.constant 0 : index
    %c0_72 = arith.constant 0 : index
    %255 = vector.load %arg8[%c0_71, %c0_72] : memref<8x256xf32, #tpu.memory_space<vmem>>, vector<8x256xf32>
    %c0_73 = arith.constant 0 : index
    %c0_74 = arith.constant 0 : index
    %256 = vector.load %arg9[%c0_73, %c0_74] : memref<1x256xf32, #tpu.memory_space<vmem>>, vector<1x256xf32>
    %257 = vector.extract_strided_slice %63 {offsets = [0, 0], sizes = [8, 1], strides = [1, 1]} : vector<8x2xf32> to vector<8x1xf32>
    %258 = vector.extract_strided_slice %255 {offsets = [2, 0], sizes = [1, 256], strides = [1, 1]} : vector<8x256xf32> to vector<1x256xf32>
    %259 = vector.broadcast %257 : vector<8x1xf32> to vector<8x256xf32>
    %260 = vector.broadcast %258 : vector<1x256xf32> to vector<8x256xf32>
    %261 = arith.mulf %259, %260 : vector<8x256xf32>
    %262 = vector.broadcast %256 : vector<1x256xf32> to vector<8x256xf32>
    %263 = arith.addf %262, %261 : vector<8x256xf32>
    %264 = vector.extract_strided_slice %63 {offsets = [0, 1], sizes = [8, 1], strides = [1, 1]} : vector<8x2xf32> to vector<8x1xf32>
    %265 = vector.extract_strided_slice %255 {offsets = [3, 0], sizes = [1, 256], strides = [1, 1]} : vector<8x256xf32> to vector<1x256xf32>
    %266 = vector.broadcast %264 : vector<8x1xf32> to vector<8x256xf32>
    %267 = vector.broadcast %265 : vector<1x256xf32> to vector<8x256xf32>
    %268 = arith.mulf %266, %267 : vector<8x256xf32>
    %269 = arith.addf %263, %268 : vector<8x256xf32>
    %270 = vector.extract_strided_slice %255 {offsets = [4, 0], sizes = [1, 256], strides = [1, 1]} : vector<8x256xf32> to vector<1x256xf32>
    %271 = vector.broadcast %7 : vector<8x1xf32> to vector<8x256xf32>
    %272 = vector.broadcast %270 : vector<1x256xf32> to vector<8x256xf32>
    %273 = arith.mulf %271, %272 : vector<8x256xf32>
    %274 = arith.addf %269, %273 : vector<8x256xf32>
    %275 = vector.extract_strided_slice %255 {offsets = [0, 0], sizes = [1, 256], strides = [1, 1]} : vector<8x256xf32> to vector<1x256xf32>
    %276 = vector.broadcast %2 : vector<8x1xf32> to vector<8x256xf32>
    %277 = vector.broadcast %275 : vector<1x256xf32> to vector<8x256xf32>
    %278 = arith.mulf %276, %277 : vector<8x256xf32>
    %279 = arith.addf %274, %278 : vector<8x256xf32>
    %280 = vector.extract_strided_slice %255 {offsets = [1, 0], sizes = [1, 256], strides = [1, 1]} : vector<8x256xf32> to vector<1x256xf32>
    %281 = vector.broadcast %3 : vector<8x1xf32> to vector<8x256xf32>
    %282 = vector.broadcast %280 : vector<1x256xf32> to vector<8x256xf32>
    %283 = arith.mulf %281, %282 : vector<8x256xf32>
    %284 = arith.addf %279, %283 : vector<8x256xf32>
    %285 = vector.extract_strided_slice %255 {offsets = [0, 0], sizes = [1, 256], strides = [1, 1]} : vector<8x256xf32> to vector<1x256xf32>
    %286 = vector.broadcast %285 : vector<1x256xf32> to vector<8x256xf32>
    %287 = arith.addf %274, %286 : vector<8x256xf32>
    %c0_75 = arith.constant 0 : index
    %c0_76 = arith.constant 0 : index
    %288 = vector.load %arg21[%c0_75, %c0_76] : memref<32x256xf32, #tpu.memory_space<vmem>>, vector<8x256xf32>
    tpu.vector_store %arg21[%c0_75, %c0_76], %251 {strides = array<i32>} : memref<32x256xf32, #tpu.memory_space<vmem>>, vector<8x256xf32>,
    %c8_77 = arith.constant 8 : index
    %c0_78 = arith.constant 0 : index
    %289 = vector.load %arg21[%c8_77, %c0_78] : memref<32x256xf32, #tpu.memory_space<vmem>>, vector<8x256xf32>
    tpu.vector_store %arg21[%c8_77, %c0_78], %254 {strides = array<i32>} : memref<32x256xf32, #tpu.memory_space<vmem>>, vector<8x256xf32>,
    %c16 = arith.constant 16 : index
    %c0_79 = arith.constant 0 : index
    %290 = vector.load %arg21[%c16, %c0_79] : memref<32x256xf32, #tpu.memory_space<vmem>>, vector<8x256xf32>
    tpu.vector_store %arg21[%c16, %c0_79], %284 {strides = array<i32>} : memref<32x256xf32, #tpu.memory_space<vmem>>, vector<8x256xf32>,
    %c24 = arith.constant 24 : index
    %c0_80 = arith.constant 0 : index
    %291 = vector.load %arg21[%c24, %c0_80] : memref<32x256xf32, #tpu.memory_space<vmem>>, vector<8x256xf32>
    tpu.vector_store %arg21[%c24, %c0_80], %287 {strides = array<i32>} : memref<32x256xf32, #tpu.memory_space<vmem>>, vector<8x256xf32>,
    %c0_81 = arith.constant 0 : index
    %c0_82 = arith.constant 0 : index
    %292 = vector.load %arg21[%c0_81, %c0_82] : memref<32x256xf32, #tpu.memory_space<vmem>>, vector<32x256xf32>
    %293 = math.tanh %292 : vector<32x256xf32>
    %294 = arith.truncf %293 : vector<32x256xf32> to vector<32x256xbf16>
    %c0_83 = arith.constant 0 : index
    %c0_84 = arith.constant 0 : index
    %295 = vector.load %arg10[%c0_83, %c0_84] : memref<256x256xbf16, #tpu.memory_space<vmem>>, vector<256x256xbf16>
    %cst_85 = arith.constant dense<0.000000e+00> : vector<32x256xf32>
    %296 = tpu.matmul %294, %295, %cst_85 {dimension_numbers = #tpu.dot_dimension_numbers<[1], [0], [0], [1], [0, 0, 1, 1], [], []>} : vector<32x256xbf16>, vector<256x256xbf16>, vector<32x256xf32> -> vector<32x256xf32>
    %c0_86 = arith.constant 0 : index
    %c0_87 = arith.constant 0 : index
    %297 = vector.load %arg11[%c0_86, %c0_87] : memref<1x256xf32, #tpu.memory_space<vmem>>, vector<1x256xf32>
    %298 = vector.broadcast %297 : vector<1x256xf32> to vector<32x256xf32>
    %299 = arith.addf %296, %298 : vector<32x256xf32>
    %300 = math.tanh %299 : vector<32x256xf32>
    %301 = arith.truncf %300 : vector<32x256xf32> to vector<32x256xbf16>
    %c0_88 = arith.constant 0 : index
    %c0_89 = arith.constant 0 : index
    %302 = vector.load %arg12[%c0_88, %c0_89] : memref<256x128xbf16, #tpu.memory_space<vmem>>, vector<256x128xbf16>
    %cst_90 = arith.constant dense<0.000000e+00> : vector<32x128xf32>
    %303 = tpu.matmul %301, %302, %cst_90 {dimension_numbers = #tpu.dot_dimension_numbers<[1], [0], [0], [1], [0, 0, 1, 1], [], []>} : vector<32x256xbf16>, vector<256x128xbf16>, vector<32x128xf32> -> vector<32x128xf32>
    %c0_91 = arith.constant 0 : index
    %c0_92 = arith.constant 0 : index
    %304 = vector.load %arg13[%c0_91, %c0_92] : memref<1x128xf32, #tpu.memory_space<vmem>>, vector<1x128xf32>
    %305 = vector.broadcast %304 : vector<1x128xf32> to vector<32x128xf32>
    %306 = arith.addf %303, %305 : vector<32x128xf32>
    %307 = vector.extract_strided_slice %306 {offsets = [0, 0], sizes = [8, 2], strides = [1, 1]} : vector<32x128xf32> to vector<8x2xf32>
    %308 = vector.extract_strided_slice %306 {offsets = [8, 0], sizes = [8, 2], strides = [1, 1]} : vector<32x128xf32> to vector<8x2xf32>
    %309 = arith.subf %307, %308 : vector<8x2xf32>
    %310 = vector.broadcast %7 : vector<8x1xf32> to vector<8x2xf32>
    %311 = arith.mulf %310, %309 : vector<8x2xf32>
    %312 = arith.addf %206, %311 : vector<8x2xf32>
    %313 = vector.extract_strided_slice %306 {offsets = [16, 0], sizes = [8, 2], strides = [1, 1]} : vector<32x128xf32> to vector<8x2xf32>
    %314 = vector.extract_strided_slice %306 {offsets = [24, 0], sizes = [8, 2], strides = [1, 1]} : vector<32x128xf32> to vector<8x2xf32>
    %315 = arith.subf %313, %314 : vector<8x2xf32>
    %316 = vector.broadcast %7 : vector<8x1xf32> to vector<8x2xf32>
    %317 = arith.mulf %316, %315 : vector<8x2xf32>
    %318 = arith.addf %63, %317 : vector<8x2xf32>
    %c0_93 = arith.constant 0 : index
    %c0_94 = arith.constant 0 : index
    %319 = vector.load %arg14[%c0_93, %c0_94] : memref<8x256xf32, #tpu.memory_space<vmem>>, vector<8x256xf32>
    %c0_95 = arith.constant 0 : index
    %c0_96 = arith.constant 0 : index
    %320 = vector.load %arg15[%c0_95, %c0_96] : memref<1x256xf32, #tpu.memory_space<vmem>>, vector<1x256xf32>
    %321 = vector.extract_strided_slice %119 {offsets = [0, 0], sizes = [8, 1], strides = [1, 1]} : vector<8x2xf32> to vector<8x1xf32>
    %322 = vector.extract_strided_slice %319 {offsets = [2, 0], sizes = [1, 256], strides = [1, 1]} : vector<8x256xf32> to vector<1x256xf32>
    %323 = vector.broadcast %321 : vector<8x1xf32> to vector<8x256xf32>
    %324 = vector.broadcast %322 : vector<1x256xf32> to vector<8x256xf32>
    %325 = arith.mulf %323, %324 : vector<8x256xf32>
    %326 = vector.broadcast %320 : vector<1x256xf32> to vector<8x256xf32>
    %327 = arith.addf %326, %325 : vector<8x256xf32>
    %328 = vector.extract_strided_slice %119 {offsets = [0, 1], sizes = [8, 1], strides = [1, 1]} : vector<8x2xf32> to vector<8x1xf32>
    %329 = vector.extract_strided_slice %319 {offsets = [3, 0], sizes = [1, 256], strides = [1, 1]} : vector<8x256xf32> to vector<1x256xf32>
    %330 = vector.broadcast %328 : vector<8x1xf32> to vector<8x256xf32>
    %331 = vector.broadcast %329 : vector<1x256xf32> to vector<8x256xf32>
    %332 = arith.mulf %330, %331 : vector<8x256xf32>
    %333 = arith.addf %327, %332 : vector<8x256xf32>
    %334 = vector.extract_strided_slice %319 {offsets = [4, 0], sizes = [1, 256], strides = [1, 1]} : vector<8x256xf32> to vector<1x256xf32>
    %335 = vector.broadcast %7 : vector<8x1xf32> to vector<8x256xf32>
    %336 = vector.broadcast %334 : vector<1x256xf32> to vector<8x256xf32>
    %337 = arith.mulf %335, %336 : vector<8x256xf32>
    %338 = arith.addf %333, %337 : vector<8x256xf32>
    %339 = vector.extract_strided_slice %319 {offsets = [0, 0], sizes = [1, 256], strides = [1, 1]} : vector<8x256xf32> to vector<1x256xf32>
    %340 = vector.broadcast %2 : vector<8x1xf32> to vector<8x256xf32>
    %341 = vector.broadcast %339 : vector<1x256xf32> to vector<8x256xf32>
    %342 = arith.mulf %340, %341 : vector<8x256xf32>
    %343 = arith.addf %338, %342 : vector<8x256xf32>
    %344 = vector.extract_strided_slice %319 {offsets = [1, 0], sizes = [1, 256], strides = [1, 1]} : vector<8x256xf32> to vector<1x256xf32>
    %345 = vector.broadcast %3 : vector<8x1xf32> to vector<8x256xf32>
    %346 = vector.broadcast %344 : vector<1x256xf32> to vector<8x256xf32>
    %347 = arith.mulf %345, %346 : vector<8x256xf32>
    %348 = arith.addf %343, %347 : vector<8x256xf32>
    %349 = vector.extract_strided_slice %319 {offsets = [0, 0], sizes = [1, 256], strides = [1, 1]} : vector<8x256xf32> to vector<1x256xf32>
    %350 = vector.broadcast %349 : vector<1x256xf32> to vector<8x256xf32>
    %351 = arith.addf %338, %350 : vector<8x256xf32>
    %c0_97 = arith.constant 0 : index
    %c0_98 = arith.constant 0 : index
    %352 = vector.load %arg21[%c0_97, %c0_98] : memref<32x256xf32, #tpu.memory_space<vmem>>, vector<8x256xf32>
    tpu.vector_store %arg21[%c0_97, %c0_98], %348 {strides = array<i32>} : memref<32x256xf32, #tpu.memory_space<vmem>>, vector<8x256xf32>,
    %c8_99 = arith.constant 8 : index
    %c0_100 = arith.constant 0 : index
    %353 = vector.load %arg21[%c8_99, %c0_100] : memref<32x256xf32, #tpu.memory_space<vmem>>, vector<8x256xf32>
    tpu.vector_store %arg21[%c8_99, %c0_100], %351 {strides = array<i32>} : memref<32x256xf32, #tpu.memory_space<vmem>>, vector<8x256xf32>,
    %c0_101 = arith.constant 0 : index
    %c0_102 = arith.constant 0 : index
    %354 = vector.load %arg21[%c0_101, %c0_102] : memref<32x256xf32, #tpu.memory_space<vmem>>, vector<16x256xf32>
    %355 = math.tanh %354 : vector<16x256xf32>
    %356 = arith.truncf %355 : vector<16x256xf32> to vector<16x256xbf16>
    %c0_103 = arith.constant 0 : index
    %c0_104 = arith.constant 0 : index
    %357 = vector.load %arg16[%c0_103, %c0_104] : memref<256x256xbf16, #tpu.memory_space<vmem>>, vector<256x256xbf16>
    %cst_105 = arith.constant dense<0.000000e+00> : vector<16x256xf32>
    %358 = tpu.matmul %356, %357, %cst_105 {dimension_numbers = #tpu.dot_dimension_numbers<[1], [0], [0], [1], [0, 0, 1, 1], [], []>} : vector<16x256xbf16>, vector<256x256xbf16>, vector<16x256xf32> -> vector<16x256xf32>
    %c0_106 = arith.constant 0 : index
    %c0_107 = arith.constant 0 : index
    %359 = vector.load %arg17[%c0_106, %c0_107] : memref<1x256xf32, #tpu.memory_space<vmem>>, vector<1x256xf32>
    %360 = vector.broadcast %359 : vector<1x256xf32> to vector<16x256xf32>
    %361 = arith.addf %358, %360 : vector<16x256xf32>
    %362 = math.tanh %361 : vector<16x256xf32>
    %363 = arith.truncf %362 : vector<16x256xf32> to vector<16x256xbf16>
    %c0_108 = arith.constant 0 : index
    %c0_109 = arith.constant 0 : index
    %364 = vector.load %arg18[%c0_108, %c0_109] : memref<256x128xbf16, #tpu.memory_space<vmem>>, vector<256x128xbf16>
    %cst_110 = arith.constant dense<0.000000e+00> : vector<16x128xf32>
    %365 = tpu.matmul %363, %364, %cst_110 {dimension_numbers = #tpu.dot_dimension_numbers<[1], [0], [0], [1], [0, 0, 1, 1], [], []>} : vector<16x256xbf16>, vector<256x128xbf16>, vector<16x128xf32> -> vector<16x128xf32>
    %c0_111 = arith.constant 0 : index
    %c0_112 = arith.constant 0 : index
    %366 = vector.load %arg19[%c0_111, %c0_112] : memref<1x128xf32, #tpu.memory_space<vmem>>, vector<1x128xf32>
    %367 = vector.broadcast %366 : vector<1x128xf32> to vector<16x128xf32>
    %368 = arith.addf %365, %367 : vector<16x128xf32>
    %369 = vector.extract_strided_slice %368 {offsets = [0, 0], sizes = [8, 2], strides = [1, 1]} : vector<16x128xf32> to vector<8x2xf32>
    %370 = vector.extract_strided_slice %368 {offsets = [8, 0], sizes = [8, 2], strides = [1, 1]} : vector<16x128xf32> to vector<8x2xf32>
    %371 = arith.subf %369, %370 : vector<8x2xf32>
    %372 = vector.broadcast %7 : vector<8x1xf32> to vector<8x2xf32>
    %373 = arith.mulf %372, %371 : vector<8x2xf32>
    %374 = arith.addf %119, %373 : vector<8x2xf32>
    %c0_113 = arith.constant 0 : index
    %c0_114 = arith.constant 0 : index
    %375 = vector.load %arg20[%c0_113, %c0_114] : memref<8x16xf32, #tpu.memory_space<vmem>>, vector<8x2xf32>
    tpu.vector_store %arg20[%c0_113, %c0_114], %312 {strides = array<i32>} : memref<8x16xf32, #tpu.memory_space<vmem>>, vector<8x2xf32>,
    %c0_115 = arith.constant 0 : index
    %c2 = arith.constant 2 : index
    %376 = vector.load %arg20[%c0_115, %c2] : memref<8x16xf32, #tpu.memory_space<vmem>>, vector<8x2xf32>
    tpu.vector_store %arg20[%c0_115, %c2], %374 {strides = array<i32>} : memref<8x16xf32, #tpu.memory_space<vmem>>, vector<8x2xf32>,
    %c0_116 = arith.constant 0 : index
    %c4 = arith.constant 4 : index
    %377 = vector.load %arg20[%c0_116, %c4] : memref<8x16xf32, #tpu.memory_space<vmem>>, vector<8x2xf32>
    tpu.vector_store %arg20[%c0_116, %c4], %318 {strides = array<i32>} : memref<8x16xf32, #tpu.memory_space<vmem>>, vector<8x2xf32>,
    %c0_117 = arith.constant 0 : index
    %c6 = arith.constant 6 : index
    %378 = vector.load %arg20[%c0_117, %c6] : memref<8x16xf32, #tpu.memory_space<vmem>>, vector<8x2xf32>
    tpu.vector_store %arg20[%c0_117, %c6], %221 {strides = array<i32>} : memref<8x16xf32, #tpu.memory_space<vmem>>, vector<8x2xf32>,
    %c0_118 = arith.constant 0 : index
    %c8_119 = arith.constant 8 : index
    %379 = vector.load %arg20[%c0_118, %c8_119] : memref<8x16xf32, #tpu.memory_space<vmem>>, vector<8x2xf32>
    tpu.vector_store %arg20[%c0_118, %c8_119], %119 {strides = array<i32>} : memref<8x16xf32, #tpu.memory_space<vmem>>, vector<8x2xf32>,
    %cst_120 = arith.constant 0.000000e+00 : f32
    %380 = vector.broadcast %cst_120 : f32 to vector<8x6xf32>
    %c0_121 = arith.constant 0 : index
    %c10 = arith.constant 10 : index
    %381 = vector.load %arg20[%c0_121, %c10] : memref<8x16xf32, #tpu.memory_space<vmem>>, vector<8x6xf32>
    tpu.vector_store %arg20[%c0_121, %c10], %380 {strides = array<i32>} : memref<8x16xf32, #tpu.memory_space<vmem>>, vector<8x6xf32>,
    return
  }
  func.func @transform_0(%arg0: i32) -> (i32, i32) {
    %c0_i32 = arith.constant 0 : i32
    %c0_i32_0 = arith.constant 0 : i32
    return %arg0, %c0_i32 : i32, i32
  }
  func.func @transform_1(%arg0: i32) -> (i32, i32) {
    %c0_i32 = arith.constant 0 : i32
    %c0_i32_0 = arith.constant 0 : i32
    %c0_i32_1 = arith.constant 0 : i32
    return %c0_i32, %c0_i32_0 : i32, i32
  }
  func.func @transform_2(%arg0: i32) -> (i32, i32) {
    %c0_i32 = arith.constant 0 : i32
    %c0_i32_0 = arith.constant 0 : i32
    %c0_i32_1 = arith.constant 0 : i32
    return %c0_i32, %c0_i32_0 : i32, i32
  }
  func.func @transform_3(%arg0: i32) -> (i32, i32) {
    %c0_i32 = arith.constant 0 : i32
    %c0_i32_0 = arith.constant 0 : i32
    %c0_i32_1 = arith.constant 0 : i32
    return %c0_i32, %c0_i32_0 : i32, i32
  }
  func.func @transform_4(%arg0: i32) -> (i32, i32) {
    %c0_i32 = arith.constant 0 : i32
    %c0_i32_0 = arith.constant 0 : i32
    %c0_i32_1 = arith.constant 0 : i32
    return %c0_i32, %c0_i32_0 : i32, i32
  }
  func.func @transform_5(%arg0: i32) -> (i32, i32) {
    %c0_i32 = arith.constant 0 : i32
    %c0_i32_0 = arith.constant 0 : i32
    %c0_i32_1 = arith.constant 0 : i32
    return %c0_i32, %c0_i32_0 : i32, i32
  }
  func.func @transform_6(%arg0: i32) -> (i32, i32) {
    %c0_i32 = arith.constant 0 : i32
    %c0_i32_0 = arith.constant 0 : i32
    %c0_i32_1 = arith.constant 0 : i32
    return %c0_i32, %c0_i32_0 : i32, i32
  }
  func.func @transform_7(%arg0: i32) -> (i32, i32) {
    %c0_i32 = arith.constant 0 : i32
    %c0_i32_0 = arith.constant 0 : i32
    %c0_i32_1 = arith.constant 0 : i32
    return %c0_i32, %c0_i32_0 : i32, i32
  }
  func.func @transform_8(%arg0: i32) -> (i32, i32) {
    %c0_i32 = arith.constant 0 : i32
    %c0_i32_0 = arith.constant 0 : i32
    %c0_i32_1 = arith.constant 0 : i32
    return %c0_i32, %c0_i32_0 : i32, i32
  }
  func.func @transform_9(%arg0: i32) -> (i32, i32) {
    %c0_i32 = arith.constant 0 : i32
    %c0_i32_0 = arith.constant 0 : i32
    %c0_i32_1 = arith.constant 0 : i32
    return %c0_i32, %c0_i32_0 : i32, i32
  }
  func.func @transform_10(%arg0: i32) -> (i32, i32) {
    %c0_i32 = arith.constant 0 : i32
    %c0_i32_0 = arith.constant 0 : i32
    %c0_i32_1 = arith.constant 0 : i32
    return %c0_i32, %c0_i32_0 : i32, i32
  }
  func.func @transform_11(%arg0: i32) -> (i32, i32) {
    %c0_i32 = arith.constant 0 : i32
    %c0_i32_0 = arith.constant 0 : i32
    %c0_i32_1 = arith.constant 0 : i32
    return %c0_i32, %c0_i32_0 : i32, i32
  }
  func.func @transform_12(%arg0: i32) -> (i32, i32) {
    %c0_i32 = arith.constant 0 : i32
    %c0_i32_0 = arith.constant 0 : i32
    %c0_i32_1 = arith.constant 0 : i32
    return %c0_i32, %c0_i32_0 : i32, i32
  }
  func.func @transform_13(%arg0: i32) -> (i32, i32) {
    %c0_i32 = arith.constant 0 : i32
    %c0_i32_0 = arith.constant 0 : i32
    %c0_i32_1 = arith.constant 0 : i32
    return %c0_i32, %c0_i32_0 : i32, i32
  }
  func.func @transform_14(%arg0: i32) -> (i32, i32) {
    %c0_i32 = arith.constant 0 : i32
    %c0_i32_0 = arith.constant 0 : i32
    %c0_i32_1 = arith.constant 0 : i32
    return %c0_i32, %c0_i32_0 : i32, i32
  }
  func.func @transform_15(%arg0: i32) -> (i32, i32) {
    %c0_i32 = arith.constant 0 : i32
    %c0_i32_0 = arith.constant 0 : i32
    %c0_i32_1 = arith.constant 0 : i32
    return %c0_i32, %c0_i32_0 : i32, i32
  }
  func.func @transform_16(%arg0: i32) -> (i32, i32) {
    %c0_i32 = arith.constant 0 : i32
    %c0_i32_0 = arith.constant 0 : i32
    %c0_i32_1 = arith.constant 0 : i32
    return %c0_i32, %c0_i32_0 : i32, i32
  }
  func.func @transform_17(%arg0: i32) -> (i32, i32) {
    %c0_i32 = arith.constant 0 : i32
    %c0_i32_0 = arith.constant 0 : i32
    %c0_i32_1 = arith.constant 0 : i32
    return %c0_i32, %c0_i32_0 : i32, i32
  }
  func.func @transform_18(%arg0: i32) -> (i32, i32) {
    %c0_i32 = arith.constant 0 : i32
    %c0_i32_0 = arith.constant 0 : i32
    %c0_i32_1 = arith.constant 0 : i32
    return %c0_i32, %c0_i32_0 : i32, i32
  }
  func.func @transform_19(%arg0: i32) -> (i32, i32) {
    %c0_i32 = arith.constant 0 : i32
    %c0_i32_0 = arith.constant 0 : i32
    return %arg0, %c0_i32 : i32, i32
  }
}

</mosaic_0001>

<bundles_post_ra>
// kernel: nn_forward.1
= control target key start
LH: loop header
LB: loop body
LE: loop exit
PB: predicated region body
PF: predicated region fallthrough
CT: control target
= control target key end

     0   :  { %v5068_v0 = vmov 0   ;;  %v3692_v1 = vmov 7   ;;  %v5069_v7 = vmov 1   ;;  %v3694_v8 = vmov 2   ;;  %s3697_s27 = smov 127   ;;  %s3700_s24 = smov 4   ;;  %s5044_s0 = inlined_call_operand.vmem [shape: f32[8,8], index: 0, kind: input, shape index: {}]   ;;  %s5045_s15 = inlined_call_operand.vmem [shape: bf16[256,256], index: 15, kind: input, shape index: {}]   ;;  %s5046_s7 = inlined_call_operand.vmem [shape: f32[8,256], index: 7, kind: input, shape index: {}]   ;;  %s5047_s13 = inlined_call_operand.vmem [shape: f32[8,256], index: 13, kind: input, shape index: {}]   ;;  %s5048_s17 = inlined_call_operand.vmem [shape: bf16[256,128], index: 17, kind: input, shape index: {}]   ;;  %s5049_s14 = inlined_call_operand.vmem [shape: f32[1,256], index: 14, kind: input, shape index: {}]   ;;  %s5050_s8 = inlined_call_operand.vmem [shape: f32[1,256], index: 8, kind: input, shape index: {}]   ;;  %s5051_s9 = inlined_call_operand.vmem [shape: bf16[256,256], index: 9, kind: input, shape index: {}]   ;;  %s5052_s16 = inlined_call_operand.vmem [shape: f32[1,256], index: 16, kind: input, shape index: {}]   ;;  %s5053_s11 = inlined_call_operand.vmem [shape: bf16[256,128], index: 11, kind: input, shape index: {}]   ;;  %s5054_s3 = inlined_call_operand.vmem [shape: bf16[256,256], index: 3, kind: input, shape index: {}]   ;;  %s5055_s18 = inlined_call_operand.vmem [shape: f32[1,128], index: 18, kind: input, shape index: {}]   ;;  %s5056_s10 = inlined_call_operand.vmem [shape: f32[1,256], index: 10, kind: input, shape index: {}]   ;;  %s5057_s1 = inlined_call_operand.vmem [shape: f32[8,256], index: 1, kind: input, shape index: {}]   ;;  %s5058_s2 = inlined_call_operand.vmem [shape: f32[1,256], index: 2, kind: input, shape index: {}]   ;;  %s5059_s5 = inlined_call_operand.vmem [shape: bf16[256,128], index: 5, kind: input, shape index: {}]   ;;  %s5060_s12 = inlined_call_operand.vmem [shape: f32[1,128], index: 12, kind: input, shape index: {}]   ;;  %s5061_s4 = inlined_call_operand.vmem [shape: f32[1,256], index: 4, kind: input, shape index: {}]   ;;  %s5062_s6 = inlined_call_operand.vmem [shape: f32[1,128], index: 6, kind: input, shape index: {}]   ;;  %s5063_s19 = inlined_call_operand.vmem [shape: f32[8,16], index: 19, kind: output, shape index: {}]  }
   0x1   :  { %5091 = sst [smem:[#allocation21_spill]] %s5044_s0  ;;  %3281 = vset.pattern.permute.xlu0 %v5068_v0  ;;  %3283 = vset.pattern.permute.xlu1 %v3692_v1  ;;  %v3695_v12 = vmov 3   ;;  %v72_v15 = vlaneseq  ;;  %v3343_v36 = vld [vmem:[%s5048_s17 + $0x40] sm:$0xff]   ;;  %v3345_v39 = vld [vmem:[%s5048_s17 + $0x48] sm:$0xff]   ;;  %v3347_v41 = vld [vmem:[%s5048_s17 + $0x50] sm:$0xff]   ;;  %vm2873_vm0 = vcmask 15360  }
   0x2   :  { %5092 = sst [smem:[#allocation22_spill]] %s5045_s15  ;;  %s5095_s20 = sld [smem:[#allocation21_spill]]  ;;  %v3344_v37 = vld [vmem:[%s5048_s17] sm:$0xff]   ;;  %3151 = vmatprep.subr.bf16.mxu1 %v3343_v36  ;;  %v3346_v40 = vld [vmem:[%s5048_s17 + $0x8] sm:$0xff]   ;;  %v3348_v44 = vld [vmem:[%s5048_s17 + $0x10] sm:$0xff]   ;;  %vm2879_vm1 = vcmask 31760  }
   0x3   :  { %5093 = sst [smem:[#allocation23_spill]] %s5046_s7  ;;  %s5096_s22 = sld [smem:[#allocation22_spill]]  ;;  %v3845_v18 = vshrl.u32 %v72_v15, 7  ;;  %3152 = vmatpush3.bf16.msra.mxu1 %v3344_v37  ;;  %v3349_v46 = vld [vmem:[%s5048_s17 + $0x58] sm:$0xff]   ;;  %v66_v61 = vld [vmem:[%s5049_s14] sm:$0x3] }
   0x4   :  { %5094 = sst [smem:[#allocation24_spill]] %s5047_s13  ;;  %s5097_s13 = sld [smem:[#allocation23_spill]]  ;;  %3153 = vmatprep.subr.bf16.mxu1 %v3345_v39  ;;  %v609_v1 = vld [vmem:[%s5050_s8] sm:$0x3]  ;;  %vm2885_vm2 = vcmask 48160   ;;  %vm2891_vm3 = vcmask 64560  }
   0x5   :  { %v3854_v21 = vsub.s32 4, %v3845_v18  ;;  %s5098_s0 = sld [smem:[#allocation24_spill]]  ;;  %v3968_v57 = vsub.s32 2, %v3845_v18  ;;  %v3989_v62 = vsub.s32 1, %v3845_v18  ;;  %v3992_v63 = vsub.s32 0, %v3845_v18  ;;  %s3701_s25 = smov 8  }
   0x6   :  { %v1744_v33 = vld [vmem:[%s5050_s8] sm:$0x3]  ;;  %vm2896_vm4 = vcmask 80960   ;;  %vm2898_vm5 = vcmask 130128  }
   0x7   :  { %3154 = vmatpush3.bf16.msra.mxu1 %v3346_v40  ;;  %5101 = vst [vmem:[#allocation5_spill] sm:$0xff] %v3968_v57 }
   0x8   :  { %v63_v2 = vld [vmem:[%s5095_s20] sm:$0xff]  ;;  %3155 = vmatprep.subr.bf16.mxu1 %v3347_v41 }
   0x9   :  { %69 = vperm.xlu0 %3281, %v63_v2   ;;  %112 = vperm.xlu1 %3283, %v63_v2   ;;  %v3295_v3 = vld [vmem:[%s5096_s22 + $0x4] ss:$8 sps:$4 sm:$0xff]   ;;  %v3297_v4 = vld [vmem:[%s5096_s22] ss:$8 sps:$4 sm:$0xff]   ;;  %v3298_v5 = vld [vmem:[%s5096_s22 + $0x14] ss:$8 sps:$4 sm:$0xff]  }
   0xa   :  { %379 = vmatprep.subr.bf16.mxu0 %v3295_v3  ;;  %v3300_v6 = vld [vmem:[%s5096_s22 + $0x10] ss:$8 sps:$4 sm:$0xff]   ;;  %v3301_v9 = vld [vmem:[%s5096_s22 + $0x24] ss:$8 sps:$4 sm:$0xff]   ;;  %v3303_v10 = vld [vmem:[%s5096_s22 + $0x20] ss:$8 sps:$4 sm:$0xff]  }
   0xb   :  { %380 = vmatpush1.bf16.msra.mxu0 %v3297_v4  ;;  %v3304_v11 = vld [vmem:[%s5096_s22 + $0x34] ss:$8 sps:$4 sm:$0xff]   ;;  %v3306_v13 = vld [vmem:[%s5096_s22 + $0x30] ss:$8 sps:$4 sm:$0xff]   ;;  %v3307_v14 = vld [vmem:[%s5096_s22 + $0x44] ss:$8 sps:$4 sm:$0xff]   ;;  %3156 = vmatpush3.bf16.msra.mxu1 %v3348_v44 }
   0xc   :  { %381 = vmatprep.subr.bf16.mxu0 %v3298_v5  ;;  %v3309_v16 = vld [vmem:[%s5096_s22 + $0x40] ss:$8 sps:$4 sm:$0xff]   ;;  %v3310_v17 = vld [vmem:[%s5096_s22 + $0x54] ss:$8 sps:$4 sm:$0xff]   ;;  %v3312_v19 = vld [vmem:[%s5096_s22 + $0x50] ss:$8 sps:$4 sm:$0xff]   ;;  %3157 = vmatprep.subr.bf16.mxu1 %v3349_v46 }
   0xd   :  { %3282 = vset.pattern.permute.xlu0 %v5069_v7  ;;  %3284 = vset.pattern.permute.xlu1 %v3694_v8  ;;  %v3313_v20 = vld [vmem:[%s5096_s22 + $0x64] ss:$8 sps:$4 sm:$0xff]   ;;  %v3315_v22 = vld [vmem:[%s5096_s22 + $0x60] ss:$8 sps:$4 sm:$0xff]   ;;  %v3316_v23 = vld [vmem:[%s5096_s22 + $0x74] ss:$8 sps:$4 sm:$0xff]   ;;  %v86_v8 = vrot.slane %v66_v61, %v3992_v63 }
   0xe   :  { %96 = vperm.xlu0 %3282, %v63_v2   ;;  %128 = vperm.xlu1 %3284, %v63_v2   ;;  %v3865_v24 = vld [vmem:[%s5097_s13] sm:$0xff]  ;;  %v3870_v25 = vld [vmem:[%s5097_s13 + $0x8] sm:$0xff]  ;;  %v3318_v29 = vld [vmem:[%s5096_s22 + $0x70] ss:$8 sps:$4 sm:$0xff]  }
   0xf   :  { %382 = vmatpush1.bf16.msra.mxu0 %v3300_v6  ;;  %v3877_v27 = vld [vmem:[%s5098_s0] sm:$0xff]  ;;  %v3882_v28 = vld [vmem:[%s5098_s0 + $0x8] sm:$0xff]  ;;  %v3322_v35 = vld [vmem:[%s5096_s22 + $0x94] ss:$8 sps:$4 sm:$0xff]   ;;  %v4058_v44 = vrot.slane %v3870_v25, %v3992_v63 }
  0x10   :  { %383 = vmatprep.subr.bf16.mxu0 %v3301_v9  ;;  %5099 = vst [vmem:[#allocation3_spill] sm:$0xff] %v3877_v27  ;;  %5100 = vst [vmem:[#allocation4_spill] sm:$0xff] %v3882_v28  ;;  %v3319_v31 = vld [vmem:[%s5096_s22 + $0x84] ss:$8 sps:$4 sm:$0xff]   ;;  %v3321_v34 = vld [vmem:[%s5096_s22 + $0x80] ss:$8 sps:$4 sm:$0xff]  }
  0x11   :  { %v3324_v38 = vld [vmem:[%s5096_s22 + $0x90] ss:$8 sps:$4 sm:$0xff]   ;;  %v3325_v42 = vld [vmem:[%s5096_s22 + $0xa4] ss:$8 sps:$4 sm:$0xff]   ;;  %v3327_v43 = vld [vmem:[%s5096_s22 + $0xa0] ss:$8 sps:$4 sm:$0xff]  }
  0x12   :  { %3285 = vset.pattern.permute.xlu1 %v3695_v12  ;;  %3286 = vset.pattern.permute.xlu0 %v5068_v0  ;;  %v3328_v45 = vld [vmem:[%s5096_s22 + $0xb4] ss:$8 sps:$4 sm:$0xff]   ;;  %v3330_v47 = vld [vmem:[%s5096_s22 + $0xb0] ss:$8 sps:$4 sm:$0xff]   ;;  %v3331_v48 = vld [vmem:[%s5096_s22 + $0xc4] ss:$8 sps:$4 sm:$0xff]   ;;  %v624_v12 = vrot.slane %v609_v1, %v3992_v63 }
  0x13   :  { %144 = vperm.xlu1 %3285, %v63_v2   ;;  %384 = vmatpush1.bf16.msra.mxu0 %v3303_v10  ;;  %v3333_v49 = vld [vmem:[%s5096_s22 + $0xc0] ss:$8 sps:$4 sm:$0xff]   ;;  %v3334_v50 = vld [vmem:[%s5096_s22 + $0xd4] ss:$8 sps:$4 sm:$0xff]   ;;  %v3336_v51 = vld [vmem:[%s5096_s22 + $0xd0] ss:$8 sps:$4 sm:$0xff]  }
  0x14   :  { %385 = vmatprep.subr.bf16.mxu0 %v3304_v11  ;;  %v3337_v52 = vld [vmem:[%s5096_s22 + $0xe4] ss:$8 sps:$4 sm:$0xff]   ;;  %v3339_v53 = vld [vmem:[%s5096_s22 + $0xe0] ss:$8 sps:$4 sm:$0xff]   ;;  %v3340_v54 = vld [vmem:[%s5096_s22 + $0xf4] ss:$8 sps:$4 sm:$0xff]   ;;  %v90_v11 = vrot.slane %v66_v61, %v3989_v62 }
  0x15   :  { %v3342_v55 = vld [vmem:[%s5096_s22 + $0xf0] ss:$8 sps:$4 sm:$0xff]   ;;  %v3965_v56 = vld [vmem:[%s5098_s0] sm:$0xff]  ;;  %v3973_v58 = vld [vmem:[%s5098_s0 + $0x8] sm:$0xff]  ;;  %v3998_v2 = vsub.s32 3, %v3845_v18 }
  0x16   :  { %v3978_v59 = vld [vmem:[%s5097_s13] sm:$0xff]  ;;  %v3983_v60 = vld [vmem:[%s5097_s13 + $0x8] sm:$0xff]  ;;  %v75_v3 = vrot.slane %v3965_v56, %v3968_v57  ;;  %v79_v4 = vrot.slane %v3973_v58, %v3968_v57  ;;  %v122_v36 = vrot.slane %v3973_v58, %v3854_v21  ;;  %v138_v37 = vrot.slane %v3973_v58, %v3992_v63 }
  0x17   :  { %3287 = vset.pattern.permute.xlu1 %v5069_v7  ;;  %386 = vmatpush1.bf16.msra.mxu0 %v3306_v13  ;;  %5102 = vst [vmem:[#allocation6_spill] sm:$0xff] %v3998_v2  ;;  %v613_v5 = vrot.slane %v3978_v59, %v3968_v57  ;;  %v617_v6 = vrot.slane %v3983_v60, %v3968_v57 }
  0x18   :  { %387 = vmatprep.subr.bf16.mxu0 %v3307_v14  ;;  %v102_v9 = vrot.slane %v3965_v56, %v3998_v2  ;;  %v106_v10 = vrot.slane %v3973_v58, %v3998_v2  ;;  %v628_v13 = vrot.slane %v609_v1, %v3989_v62  ;;  %v118_v14 = vrot.slane %v3965_v56, %v3854_v21 }
  0x19   :  { %v640_v18 = vrot.slane %v3983_v60, %v3998_v2  ;;  %v134_v39 = vrot.slane %v3965_v56, %v3992_v63  ;;  %v150_v40 = vrot.slane %v3965_v56, %v3989_v62  ;;  %v664_v41 = vrot.slane %v3983_v60, %v3992_v63 }
  0x1b   :  { %388 = vmatpush1.bf16.msra.mxu0 %v3309_v16 }
  0x1c   :  { %389 = vmatprep.subr.bf16.mxu0 %v3310_v17  ;;  %v636_v17 = vrot.slane %v3978_v59, %v3998_v2 }
  0x1f   :  { %390 = vmatpush1.bf16.msra.mxu0 %v3312_v19  ;;  %v648_v19 = vrot.slane %v3978_v59, %v3854_v21 }
  0x20   :  { %391 = vmatprep.subr.bf16.mxu0 %v3313_v20  ;;  %v652_v20 = vrot.slane %v3983_v60, %v3854_v21 }
  0x23   :  { %392 = vmatpush1.bf16.msra.mxu0 %v3315_v22 }
  0x24   :  { %393 = vmatprep.subr.bf16.mxu0 %v3316_v23 }
  0x27   :  { %394 = vmatpush1.bf16.msra.mxu0 %v3318_v29 }
  0x28   :  { %395 = vmatprep.subr.bf16.mxu0 %v3319_v31 }
  0x2b   :  { %396 = vmatpush1.bf16.msra.mxu0 %v3321_v34  ;;  %v660_v34 = vrot.slane %v3978_v59, %v3992_v63 }
  0x2c   :  { %397 = vmatprep.subr.bf16.mxu0 %v3322_v35  ;;  %v672_v35 = vrot.slane %v3978_v59, %v3989_v62 }
  0x2f   :  { %398 = vmatpush1.bf16.msra.mxu0 %v3324_v38  ;;  %v154_v38 = vrot.slane %v3973_v58, %v3989_v62 }
  0x30   :  { %399 = vmatprep.subr.bf16.mxu0 %v3325_v42  ;;  %v676_v42 = vrot.slane %v3983_v60, %v3989_v62 }
  0x33   :  { %400 = vmatpush1.bf16.msra.mxu0 %v3327_v43  ;;  %v4054_v43 = vrot.slane %v3865_v24, %v3992_v63 }
  0x34   :  { %401 = vmatprep.subr.bf16.mxu0 %v3328_v45  ;;  %v4062_v45 = vrot.slane %v3877_v27, %v3992_v63 }
  0x36   :  { %5103 = vst [vmem:[#allocation7_spill] sm:$0xff] %v4062_v45 }
  0x37   :  { %402 = vmatpush1.bf16.msra.mxu0 %v3330_v47 }
  0x38   :  { %403 = vmatprep.subr.bf16.mxu0 %v3331_v48 }
  0x3b   :  { %404 = vmatpush1.bf16.msra.mxu0 %v3333_v49 }
  0x3c   :  { %405 = vmatprep.subr.bf16.mxu0 %v3334_v50 }
  0x3f   :  { %406 = vmatpush1.bf16.msra.mxu0 %v3336_v51 }
  0x40   :  { %407 = vmatprep.subr.bf16.mxu0 %v3337_v52 }
  0x43   :  { %408 = vmatpush1.bf16.msra.mxu0 %v3339_v53 }
  0x44   :  { %409 = vmatprep.subr.bf16.mxu0 %v3340_v54 }
  0x47   :  { %410 = vmatpush1.bf16.msra.mxu0 %v3342_v55 }
  0x88   :  { %v4018_v15 = vpop.permute.xlu0 %69  ;;  %v4020_v16 = vpop.permute.xlu1 %112 }
  0x89   :  { %v80_v22 = vmul.f32 %v75_v3, %v4018_v15  ;;  %v81_v23 = vmul.f32 %v79_v4, %v4018_v15  ;;  %v618_v29 = vmul.f32 %v613_v5, %v4018_v15  ;;  %v619_v31 = vmul.f32 %v617_v6, %v4018_v15 }
  0x8a   :  { %v123_v56 = vmul.f32 %v118_v14, %v4020_v16  ;;  %v653_v58 = vmul.f32 %v648_v19, %v4020_v16  ;;  %v654_v59 = vmul.f32 %v652_v20, %v4020_v16  ;;  %v124_v60 = vmul.f32 %v122_v36, %v4020_v16 }
  0x8b   :  { %v93_v46 = vadd.f32 %v86_v8, %v80_v22  ;;  %v94_v47 = vadd.f32 %v90_v11, %v81_v23  ;;  %v631_v48 = vadd.f32 %v624_v12, %v618_v29  ;;  %v632_v49 = vadd.f32 %v628_v13, %v619_v31 }
  0x8d   :  { %v4064_v50 = vpop.permute.xlu0 %96  ;;  %v129_v51 = vpop.permute.xlu1 %128 }
  0x8e   :  { %v107_v52 = vmul.f32 %v102_v9, %v4064_v50  ;;  %v108_v53 = vmul.f32 %v106_v10, %v4064_v50  ;;  %v641_v54 = vmul.f32 %v636_v17, %v4064_v50  ;;  %v642_v55 = vmul.f32 %v640_v18, %v4064_v50 }
  0x8f   :  { %v665_v5 = vmul.f32 %v660_v34, %v129_v51  ;;  %v140_v6 = vmul.f32 %v138_v37, %v129_v51  ;;  %v139_v8 = vmul.f32 %v134_v39, %v129_v51  ;;  %v4076_v9 = vrot.slane %v3882_v28, %v3992_v63 }
  0x90   :  { %v109_v61 = vadd.f32 %v107_v52, %v93_v46  ;;  %v110_v1 = vadd.f32 %v108_v53, %v94_v47  ;;  %v643_v3 = vadd.f32 %v641_v54, %v631_v48  ;;  %v644_v4 = vadd.f32 %v642_v55, %v632_v49 }
  0x91   :  { %5104 = vst [vmem:[#allocation8_spill] sm:$0xff] %v4076_v9  ;;  %v666_v19 = vmul.f32 %v664_v41, %v129_v51  ;;  %v4085_v53 = vmul.f32 %v4054_v43, %v129_v51 }
  0x92   :  { %v125_v10 = vadd.f32 %v123_v56, %v109_v61  ;;  %v655_v11 = vadd.f32 %v653_v58, %v643_v3  ;;  %v656_v12 = vadd.f32 %v654_v59, %v644_v4  ;;  %v4078_v13 = vpop.permute.xlu1 %144  ;;  %v126_v14 = vadd.f32 %v124_v60, %v110_v1  ;;  %v3350_v4 = vld [vmem:[%s5048_s17 + $0x18] sm:$0xff]  }
  0x93   :  { %v156_v17 = vmul.f32 %v154_v38, %v4078_v13  ;;  %v155_v18 = vmul.f32 %v150_v40, %v4078_v13  ;;  %v678_v20 = vmul.f32 %v676_v42, %v4078_v13  ;;  %v677_v36 = vmul.f32 %v672_v35, %v4078_v13  ;;  %3158 = vmatpush3.bf16.msra.mxu1 %v3350_v4  ;;  %v4175_v4 = vld [vmem:[%s5051_s9 + $0x44] ss:$8 sps:$4 sm:$0xff]  }
  0x94   :  { %v681_v22 = vadd.f32 %v660_v34, %v655_v11  ;;  %v142_v23 = vadd.f32 %v140_v6, %v126_v14  ;;  %v160_v29 = vadd.f32 %v138_v37, %v126_v14  ;;  %v141_v31 = vadd.f32 %v139_v8, %v125_v10  ;;  %v3352_v6 = vld [vmem:[%s5048_s17 + $0x20] sm:$0xff]   ;;  %v3353_v8 = vld [vmem:[%s5048_s17 + $0x68] sm:$0xff]   ;;  %v3357_v14 = vld [vmem:[%s5048_s17 + $0x78] sm:$0xff]  }
  0x95   :  { %v159_v46 = vadd.f32 %v134_v39, %v125_v10  ;;  %v668_v47 = vadd.f32 %v666_v19, %v656_v12  ;;  %v667_v48 = vadd.f32 %v665_v5, %v655_v11  ;;  %v4088_v40 = vmul.f32 %v4058_v44, %v129_v51  ;;  %v3351_v5 = vld [vmem:[%s5048_s17 + $0x60] sm:$0xff]   ;;  %v3354_v10 = vld [vmem:[%s5048_s17 + $0x28] sm:$0xff]   ;;  %v3355_v11 = vld [vmem:[%s5048_s17 + $0x70] sm:$0xff]  }
  0x96   :  { %3588 = vtanh.f32 %v681_v22  ;;  %v158_v49 = vadd.f32 %v156_v17, %v142_v23  ;;  %v157_v52 = vadd.f32 %v155_v18, %v141_v31  ;;  %v682_v34 = vadd.f32 %v664_v41, %v656_v12  ;;  %3159 = vmatprep.subr.bf16.mxu1 %v3351_v5  ;;  %v3356_v12 = vld [vmem:[%s5048_s17 + $0x30] sm:$0xff]   ;;  %v3358_v17 = vld [vmem:[%s5048_s17 + $0x38] sm:$0xff]   ;;  %v3361_v18 = vld [vmem:[%s5051_s9 + $0x4] ss:$8 sps:$4 sm:$0xff]  }
  0x97   :  { %3590 = vtanh.f32 %v160_v29  ;;  %v680_v38 = vadd.f32 %v678_v20, %v668_v47  ;;  %v679_v37 = vadd.f32 %v677_v36, %v667_v48  ;;  %v4091_v35 = vmul.f32 %v4062_v45, %v129_v51  ;;  %3160 = vmatpush3.bf16.msra.mxu1 %v3352_v6  ;;  %v207_v19 = vld [vmem:[%s5052_s16] sm:$0x3]  ;;  %v4187_v6 = vld [vmem:[%s5051_s9 + $0x54] ss:$8 sps:$4 sm:$0xff]  }
  0x98   :  { %3592 = vtanh.f32 %v158_v49  ;;  %v4094_v39 = vmul.f32 %v4076_v9, %v129_v51  ;;  %3161 = vmatprep.subr.bf16.mxu1 %v3353_v8  ;;  %v212_v20 = vrot.slane %v207_v19, %v3992_v63  ;;  %v216_v22 = vrot.slane %v207_v19, %v3989_v62  ;;  %v4181_v5 = vld [vmem:[%s5051_s9 + $0x40] ss:$8 sps:$4 sm:$0xff]   ;;  %v4193_v8 = vld [vmem:[%s5051_s9 + $0x50] ss:$8 sps:$4 sm:$0xff]   ;;  %v4235_v19 = vld [vmem:[%s5051_s9 + $0x94] ss:$8 sps:$4 sm:$0xff]  }
  0x99   :  { %3594 = vtanh.f32 %v157_v52  ;;  %5105 = vst [vmem:[#allocation9_spill] sm:$0xff] %v4091_v35  ;;  %5110 = vst [vmem:[#allocation14_spill] sm:$0xff] %v4235_v19 }
  0x9a   :  { %5106 = vst [vmem:[#allocation10_spill] sm:$0xff] %v4094_v39  ;;  %3596 = vtanh.f32 %v159_v46 }
  0x9b   :  { %3598 = vtanh.f32 %v680_v38  ;;  %3162 = vmatpush3.bf16.msra.mxu1 %v3354_v10  ;;  %v4199_v10 = vld [vmem:[%s5051_s9 + $0x64] ss:$8 sps:$4 sm:$0xff]  }
  0x9c   :  { %3600 = vtanh.f32 %v682_v34  ;;  %3163 = vmatprep.subr.bf16.mxu1 %v3355_v11  ;;  %v4205_v11 = vld [vmem:[%s5051_s9 + $0x60] ss:$8 sps:$4 sm:$0xff]  }
  0x9d   :  { %3602 = vtanh.f32 %v679_v37 }
  0x9f   :  { %3164 = vmatpush3.bf16.msra.mxu1 %v3356_v12  ;;  %v4211_v12 = vld [vmem:[%s5051_s9 + $0x74] ss:$8 sps:$4 sm:$0xff]  }
  0xa0   :  { %v4096_v42 = vpop.eup %3588  ;;  %3165 = vmatprep.subr.bf16.mxu1 %v3357_v14  ;;  %v4217_v14 = vld [vmem:[%s5051_s9 + $0x70] ss:$8 sps:$4 sm:$0xff]  }
  0xa1   :  { %v3591_v54 = vpop.eup %3590  ;;  %5107 = vst [vmem:[#allocation11_spill] sm:$0xff] %v4217_v14 }
  0xa2   :  { %v3593_v55 = vpop.eup %3592 }
  0xa3   :  { %v3595_v56 = vpop.eup %3594  ;;  %v174_v58 = vpack.c.bf16 %v3591_v54, %v3593_v55  ;;  %3166 = vmatpush3.bf16.msra.mxu1 %v3358_v17  ;;  %v4223_v17 = vld [vmem:[%s5051_s9 + $0x84] ss:$8 sps:$4 sm:$0xff]  }
  0xa4   :  { %v3597_v59 = vpop.eup %3596  ;;  %901 = vmatprep.subr.bf16.mxu1 %v3361_v18  ;;  %5108 = vst [vmem:[#allocation12_spill] sm:$0xff] %v4223_v17  ;;  %v4229_v18 = vld [vmem:[%s5051_s9 + $0x80] ss:$8 sps:$4 sm:$0xff]  }
  0xa5   :  { %v3599_v41 = vpop.eup %3598  ;;  %411 = vmatprep.mubr.bf16.mxu0 %v174_v58  ;;  %v173_v60 = vpack.c.bf16 %v3597_v59, %v3595_v56  ;;  %v3359_v56 = vld [vmem:[%s5051_s9] ss:$8 sps:$4 sm:$0xff]   ;;  %v3364_v58 = vld [vmem:[%s5051_s9 + $0x14] ss:$8 sps:$4 sm:$0xff]   ;;  %v4146_v59 = vld [vmem:[%s5051_s9 + $0x10] ss:$8 sps:$4 sm:$0xff]  }
  0xa6   :  { %v3601_v61 = vpop.eup %3600  ;;  %5109 = vst [vmem:[#allocation13_spill] sm:$0xff] %v4229_v18 }
  0xa7   :  { %v4098_v1 = vpop.eup %3602  ;;  %412 = vmatmul.mubr.bf16.vlgmr.msra.gmra.mrb[0].mxu0 %v173_v60  ;;  %v696_v51 = vpack.c.bf16 %v3601_v61, %v3599_v41  ;;  %v4151_v41 = vld [vmem:[%s5051_s9 + $0x24] ss:$8 sps:$4 sm:$0xff]   ;;  %v4157_v60 = vld [vmem:[%s5051_s9 + $0x20] ss:$8 sps:$4 sm:$0xff]   ;;  %v4163_v61 = vld [vmem:[%s5051_s9 + $0x34] ss:$8 sps:$4 sm:$0xff]  }
  0xa8   :  { %v695_v3 = vpack.c.bf16 %v4096_v42, %v4098_v1  ;;  %v3411_v42 = vld [vmem:[%s5053_s11 + $0x50] sm:$0xff]  }
  0xa9   :  { %v3412_v1 = vld [vmem:[%s5053_s11 + $0x10] sm:$0xff]  }
 0x17a   :  { %v413_v23 = vpop.f32.mrb[0].mxu0 }
 0x17b   :  { %v414_v29 = vadd.f32 %v413_v23, %v212_v20  ;;  %v415_v31 = vpop.f32.mrb[1].mxu0  ;;  %v3389_v23 = vld [vmem:[%s5051_s9 + $0xa0] ss:$8 sps:$4 sm:$0xff]  }
 0x17c   :  { %v416_v36 = vadd.f32 %v415_v31, %v216_v22  ;;  %v417_v46 = vpop.f32.mrb[2].mxu0  ;;  %v3392_v31 = vld [vmem:[%s5051_s9 + $0xb0] ss:$8 sps:$4 sm:$0xff]  }
 0x17d   :  { %3604 = vtanh.f32 %v414_v29  ;;  %v418_v47 = vadd.f32 %v417_v46, %v212_v20  ;;  %v419_v48 = vpop.f32.mrb[3].mxu0  ;;  %v4241_v20 = vld [vmem:[%s5051_s9 + $0x90] ss:$8 sps:$4 sm:$0xff]   ;;  %v3394_v29 = vld [vmem:[%s5051_s9 + $0xb4] ss:$8 sps:$4 sm:$0xff]  }
 0x17e   :  { %3606 = vtanh.f32 %v416_v36  ;;  %v420_v49 = vadd.f32 %v419_v48, %v216_v22  ;;  %5111 = vst [vmem:[#allocation15_spill] sm:$0xff] %v4241_v20  ;;  %v3391_v22 = vld [vmem:[%s5051_s9 + $0xa4] ss:$8 sps:$4 sm:$0xff]   ;;  %v3395_v46 = vld [vmem:[%s5051_s9 + $0xc0] ss:$8 sps:$4 sm:$0xff]  }
 0x17f   :  { %3608 = vtanh.f32 %v418_v47  ;;  %v3397_v36 = vld [vmem:[%s5051_s9 + $0xc4] ss:$8 sps:$4 sm:$0xff]   ;;  %v3400_v47 = vld [vmem:[%s5051_s9 + $0xd4] ss:$8 sps:$4 sm:$0xff]   ;;  %v3398_v48 = vld [vmem:[%s5051_s9 + $0xd0] ss:$8 sps:$4 sm:$0xff]  }
 0x180   :  { %3610 = vtanh.f32 %v420_v49  ;;  %v3403_v49 = vld [vmem:[%s5051_s9 + $0xe4] ss:$8 sps:$4 sm:$0xff]  }
 0x187   :  { %v3605_v52 = vpop.eup %3604 }
 0x188   :  { %v3607_v38 = vpop.eup %3606 }
 0x189   :  { %v3609_v34 = vpop.eup %3608 }
 0x18a   :  { %v3611_v37 = vpop.eup %3610  ;;  %v426_v54 = vpack.c.bf16 %v3609_v34, %v3605_v52  ;;  %v3401_v52 = vld [vmem:[%s5051_s9 + $0xe0] ss:$8 sps:$4 sm:$0xff]   ;;  %v3404_v34 = vld [vmem:[%s5051_s9 + $0xf0] ss:$8 sps:$4 sm:$0xff]  }
 0x18b   :  { %v427_v55 = vpack.c.bf16 %v3611_v37, %v3607_v38  ;;  %v3406_v38 = vld [vmem:[%s5051_s9 + $0xf4] ss:$8 sps:$4 sm:$0xff]   ;;  %v3407_v37 = vld [vmem:[%s5053_s11 + $0x40] sm:$0xff]  }
 0x18c   :  { %3173 = vmatprep.subr.bf16.mxu0 %v3407_v37 }
 0x18d   :  { %595 = vmatprep.mubr.bf16.mxu1 %v427_v55  ;;  %v3409_v55 = vld [vmem:[%s5053_s11 + $0x48] sm:$0xff]  }
 0x18e   :  { %596 = vmatmul.mubr.bf16.vlgmr.msra.gmra.mrb[0].mxu1 %v426_v54  ;;  %v3408_v54 = vld [vmem:[%s5053_s11] sm:$0xff]  }
 0x18f   :  { %902 = vmatpush1.bf16.msra.mxu1 %v3359_v56  ;;  %933 = vmatprep.mubr.bf16.mxu1 %v696_v51  ;;  %v4169_v51 = vld [vmem:[%s5051_s9 + $0x30] ss:$8 sps:$4 sm:$0xff]   ;;  %v3410_v56 = vld [vmem:[%s5053_s11 + $0x8] sm:$0xff]  }
 0x190   :  { %903 = vmatprep.subr.bf16.mxu1 %v3364_v58  ;;  %3174 = vmatpush3.bf16.msra.mxu0 %v3408_v54  ;;  %v3414_v58 = vld [vmem:[%s5053_s11 + $0x18] sm:$0xff]   ;;  %v2936_v54 = vld [vmem:[%s5055_s18] ss:$0 sm:$0xff] }
 0x191   :  { %3175 = vmatprep.subr.bf16.mxu0 %v3409_v55 }
 0x193   :  { %904 = vmatpush1.bf16.msra.mxu1 %v4146_v59 }
 0x194   :  { %905 = vmatprep.subr.bf16.mxu1 %v4151_v41  ;;  %3176 = vmatpush3.bf16.msra.mxu0 %v3410_v56 }
 0x195   :  { %3177 = vmatprep.subr.bf16.mxu0 %v3411_v42 }
 0x197   :  { %906 = vmatpush1.bf16.msra.mxu1 %v4157_v60 }
 0x198   :  { %907 = vmatprep.subr.bf16.mxu1 %v4163_v61  ;;  %3178 = vmatpush3.bf16.msra.mxu0 %v3412_v1 }
 0x19b   :  { %908 = vmatpush1.bf16.msra.mxu1 %v4169_v51 }
 0x19c   :  { %909 = vmatprep.subr.bf16.mxu1 %v4175_v4 }
 0x19f   :  { %910 = vmatpush1.bf16.msra.mxu1 %v4181_v5 }
 0x1a0   :  { %911 = vmatprep.subr.bf16.mxu1 %v4187_v6 }
 0x1a3   :  { %912 = vmatpush1.bf16.msra.mxu1 %v4193_v8 }
 0x1a4   :  { %913 = vmatprep.subr.bf16.mxu1 %v4199_v10 }
 0x1a7   :  { %914 = vmatpush1.bf16.msra.mxu1 %v4205_v11 }
 0x1a8   :  { %915 = vmatprep.subr.bf16.mxu1 %v4211_v12 }
 0x1ab   :  { %916 = vmatpush1.bf16.msra.mxu1 %v4217_v14 }
 0x1ac   :  { %917 = vmatprep.subr.bf16.mxu1 %v4223_v17 }
 0x1af   :  { %918 = vmatpush1.bf16.msra.mxu1 %v4229_v18 }
 0x1b0   :  { %919 = vmatprep.subr.bf16.mxu1 %v4235_v19 }
 0x1b3   :  { %920 = vmatpush1.bf16.msra.mxu1 %v4241_v20 }
 0x1b4   :  { %921 = vmatprep.subr.bf16.mxu1 %v3391_v22  ;;  %v3415_v22 = vld [vmem:[%s5053_s11 + $0x60] sm:$0xff]  }
 0x1b7   :  { %922 = vmatpush1.bf16.msra.mxu1 %v3389_v23  ;;  %v3416_v23 = vld [vmem:[%s5053_s11 + $0x20] sm:$0xff]  }
 0x1b8   :  { %923 = vmatprep.subr.bf16.mxu1 %v3394_v29  ;;  %v3417_v29 = vld [vmem:[%s5053_s11 + $0x68] sm:$0xff]  }
 0x1bb   :  { %924 = vmatpush1.bf16.msra.mxu1 %v3392_v31  ;;  %v3418_v31 = vld [vmem:[%s5053_s11 + $0x28] sm:$0xff]  }
 0x1bc   :  { %925 = vmatprep.subr.bf16.mxu1 %v3397_v36  ;;  %v3419_v36 = vld [vmem:[%s5053_s11 + $0x70] sm:$0xff]  }
 0x1bf   :  { %926 = vmatpush1.bf16.msra.mxu1 %v3395_v46  ;;  %v3420_v46 = vld [vmem:[%s5053_s11 + $0x30] sm:$0xff]  }
 0x1c0   :  { %927 = vmatprep.subr.bf16.mxu1 %v3400_v47  ;;  %v3421_v47 = vld [vmem:[%s5053_s11 + $0x78] sm:$0xff]  }
 0x1c3   :  { %928 = vmatpush1.bf16.msra.mxu1 %v3398_v48  ;;  %v3422_v48 = vld [vmem:[%s5053_s11 + $0x38] sm:$0xff]  }
 0x1c4   :  { %929 = vmatprep.subr.bf16.mxu1 %v3403_v49  ;;  %v3425_v49 = vld [vmem:[%s5054_s3 + $0x4] ss:$8 sps:$4 sm:$0xff]  }
 0x1c7   :  { %930 = vmatpush1.bf16.msra.mxu1 %v3401_v52 }
 0x1c8   :  { %931 = vmatprep.subr.bf16.mxu1 %v3406_v38 }
 0x1cb   :  { %932 = vmatpush1.bf16.msra.mxu1 %v3404_v34 }
 0x1ce   :  { %934 = vmatmul.mubr.bf16.vlgmr.msra.gmra.mrb[4].mxu1 %v695_v3  ;;  %v3413_v3 = vld [vmem:[%s5053_s11 + $0x58] sm:$0xff]  }
 0x1cf   :  { %3179 = vmatprep.subr.bf16.mxu0 %v3413_v3 }
 0x1d0   :  { %3180 = vmatpush3.bf16.msra.mxu0 %v3414_v58 }
 0x1d1   :  { %3181 = vmatprep.subr.bf16.mxu0 %v3415_v22  ;;  %v4342_v22 = vld [vmem:[%s5095_s20] sm:$0xff] }
 0x1d2   :  { %5112 = vst [vmem:[#allocation16_spill] sm:$0xff] %v4342_v22 }
 0x1d4   :  { %3182 = vmatpush3.bf16.msra.mxu0 %v3416_v23 }
 0x1d5   :  { %3183 = vmatprep.subr.bf16.mxu0 %v3417_v29 }
 0x1d8   :  { %3184 = vmatpush3.bf16.msra.mxu0 %v3418_v31  ;;  %v3696_v31 = vmov 6  }
 0x1d9   :  { %3185 = vmatprep.subr.bf16.mxu0 %v3419_v36  ;;  %v729_v36 = vld [vmem:[%s5056_s10] sm:$0x3] }
 0x1dc   :  { %3186 = vmatpush3.bf16.msra.mxu0 %v3420_v46  ;;  %v734_v46 = vrot.slane %v729_v36, %v3992_v63 }
 0x1dd   :  { %3187 = vmatprep.subr.bf16.mxu0 %v3421_v47  ;;  %v738_v47 = vrot.slane %v729_v36, %v3989_v62  ;;  %v3423_v36 = vld [vmem:[%s5054_s3] ss:$8 sps:$4 sm:$0xff]  }
 0x1e0   :  { %3188 = vmatpush3.bf16.msra.mxu0 %v3422_v48 }
 0x1e1   :  { %1484 = vmatprep.subr.bf16.mxu0 %v3425_v49 }
 0x261   :  { %v3167_v52 = vpop.f32.mrb[0].mxu1 }
 0x262   :  { %v3168_v38 = vpop.f32.mrb[1].mxu1 }
 0x263   :  { %v3169_v34 = vadd.f32 %v3168_v38, %v3167_v52  ;;  %v3170_v37 = vpop.f32.mrb[2].mxu1 }
 0x264   :  { %v3171_v55 = vpop.f32.mrb[3].mxu1 }
 0x265   :  { %v3172_v56 = vadd.f32 %v3171_v55, %v3170_v37  ;;  %v598_v42 = vadd.f32 %v3169_v34, %v2936_v54 }
 0x267   :  { %v601_v1 = vadd.f32 %v3172_v56, %v2936_v54 }
 0x269   :  { %v604_v3 = vsub.f32 %v598_v42, %v601_v1 }
 0x26b   :  { %v605_v58 = vmul.f32 %v604_v3, %v4020_v16 }
 0x26d   :  { %v4345_v23 = vadd.f32 %v4342_v22, %v605_v58 }
 0x26f   :  { %5113 = vst [vmem:[#allocation17_spill] sm:$0xff] %v4345_v23  ;;  %1161 = vperm.xlu1 %3287, %v4345_v23   ;;  %1134 = vperm.xlu0 %3286, %v4345_v23   ;;  %v4351_v29 = vmul.f32 %v4345_v23, %v4345_v23 }
 0x273   :  { %3288 = vset.pattern.permute.xlu1 %v3696_v31  ;;  %1711 = vrot.lane.b32.xlu0 %v4351_v29, %s3697_s27 }
 0x274   :  { %1177 = vperm.xlu1 %3288, %v4342_v22   ;;  %v4523_v22 = vrot.slane %v1744_v33, %v3989_v62 }
 0x278   :  { %3289 = vset.pattern.permute.xlu1 %v5068_v0 }
 0x2a1   :  { %v935_v48 = vpop.f32.mrb[4].mxu1 }
 0x2a2   :  { %v936_v49 = vadd.f32 %v935_v48, %v734_v46  ;;  %v937_v52 = vpop.f32.mrb[5].mxu1  ;;  %v3428_v48 = vld [vmem:[%s5054_s3 + $0x14] ss:$8 sps:$4 sm:$0xff]  }
 0x2a3   :  { %v938_v38 = vadd.f32 %v937_v52, %v738_v47  ;;  %v939_v34 = vpop.f32.mrb[6].mxu1  ;;  %v3434_v52 = vld [vmem:[%s5054_s3 + $0x34] ss:$8 sps:$4 sm:$0xff]  }
 0x2a4   :  { %3612 = vtanh.f32 %v936_v49  ;;  %v940_v37 = vadd.f32 %v939_v34, %v734_v46  ;;  %v941_v54 = vpop.f32.mrb[7].mxu1  ;;  %v3426_v46 = vld [vmem:[%s5054_s3 + $0x10] ss:$8 sps:$4 sm:$0xff]   ;;  %v3429_v49 = vld [vmem:[%s5054_s3 + $0x20] ss:$8 sps:$4 sm:$0xff]  }
 0x2a5   :  { %3614 = vtanh.f32 %v938_v38  ;;  %v942_v55 = vadd.f32 %v941_v54, %v738_v47  ;;  %v3431_v47 = vld [vmem:[%s5054_s3 + $0x24] ss:$8 sps:$4 sm:$0xff]   ;;  %v3432_v38 = vld [vmem:[%s5054_s3 + $0x30] ss:$8 sps:$4 sm:$0xff]   ;;  %v3440_v54 = vld [vmem:[%s5054_s3 + $0x54] ss:$8 sps:$4 sm:$0xff]  }
 0x2a6   :  { %3616 = vtanh.f32 %v940_v37  ;;  %v3437_v34 = vld [vmem:[%s5054_s3 + $0x44] ss:$8 sps:$4 sm:$0xff]   ;;  %v3435_v37 = vld [vmem:[%s5054_s3 + $0x40] ss:$8 sps:$4 sm:$0xff]  }
 0x2a7   :  { %3618 = vtanh.f32 %v942_v55  ;;  %v3438_v55 = vld [vmem:[%s5054_s3 + $0x50] ss:$8 sps:$4 sm:$0xff]  }
 0x2ae   :  { %v3613_v56 = vpop.eup %3612 }
 0x2af   :  { %v3615_v42 = vpop.eup %3614 }
 0x2b0   :  { %v3617_v1 = vpop.eup %3616 }
 0x2b1   :  { %v3619_v3 = vpop.eup %3618  ;;  %v948_v58 = vpack.c.bf16 %v3617_v1, %v3613_v56  ;;  %v3443_v56 = vld [vmem:[%s5054_s3 + $0x64] ss:$8 sps:$4 sm:$0xff]   ;;  %v3446_v1 = vld [vmem:[%s5054_s3 + $0x74] ss:$8 sps:$4 sm:$0xff]  }
 0x2b2   :  { %v949_v31 = vpack.c.bf16 %v3619_v3, %v3615_v42  ;;  %v3441_v42 = vld [vmem:[%s5054_s3 + $0x60] ss:$8 sps:$4 sm:$0xff]   ;;  %v3444_v3 = vld [vmem:[%s5054_s3 + $0x70] ss:$8 sps:$4 sm:$0xff]  }
 0x2b4   :  { %1117 = vmatprep.mubr.bf16.mxu0 %v949_v31  ;;  %v3447_v31 = vld [vmem:[%s5054_s3 + $0x80] ss:$8 sps:$4 sm:$0xff]  }
 0x2b5   :  { %1118 = vmatmul.mubr.bf16.vlgmr.msra.gmra.mrb[4].mxu0 %v948_v58  ;;  %v3449_v58 = vld [vmem:[%s5054_s3 + $0x84] ss:$8 sps:$4 sm:$0xff]  }
 0x2b6   :  { %1485 = vmatpush1.bf16.msra.mxu0 %v3423_v36  ;;  %v3452_v36 = vld [vmem:[%s5054_s3 + $0x94] ss:$8 sps:$4 sm:$0xff]  }
 0x2b7   :  { %1486 = vmatprep.subr.bf16.mxu0 %v3428_v48  ;;  %v3450_v48 = vld [vmem:[%s5054_s3 + $0x90] ss:$8 sps:$4 sm:$0xff]  }
 0x2ba   :  { %1487 = vmatpush1.bf16.msra.mxu0 %v3426_v46  ;;  %v3455_v46 = vld [vmem:[%s5054_s3 + $0xa4] ss:$8 sps:$4 sm:$0xff]  }
 0x2bb   :  { %1488 = vmatprep.subr.bf16.mxu0 %v3431_v47  ;;  %v3453_v47 = vld [vmem:[%s5054_s3 + $0xa0] ss:$8 sps:$4 sm:$0xff]  }
 0x2be   :  { %1489 = vmatpush1.bf16.msra.mxu0 %v3429_v49  ;;  %v3458_v49 = vld [vmem:[%s5054_s3 + $0xb4] ss:$8 sps:$4 sm:$0xff]  }
 0x2bf   :  { %1490 = vmatprep.subr.bf16.mxu0 %v3434_v52  ;;  %v3456_v52 = vld [vmem:[%s5054_s3 + $0xb0] ss:$8 sps:$4 sm:$0xff]  }
 0x2c2   :  { %1491 = vmatpush1.bf16.msra.mxu0 %v3432_v38  ;;  %v3461_v38 = vld [vmem:[%s5054_s3 + $0xc4] ss:$8 sps:$4 sm:$0xff]  }
 0x2c3   :  { %1492 = vmatprep.subr.bf16.mxu0 %v3437_v34  ;;  %v4437_v34 = vld [vmem:[%s5057_s1] sm:$0xff] }
 0x2c6   :  { %1493 = vmatpush1.bf16.msra.mxu0 %v3435_v37  ;;  %v4442_v37 = vld [vmem:[%s5057_s1 + $0x8] sm:$0xff] }
 0x2c7   :  { %1494 = vmatprep.subr.bf16.mxu0 %v3440_v54  ;;  %v3459_v54 = vld [vmem:[%s5054_s3 + $0xc0] ss:$8 sps:$4 sm:$0xff]  }
 0x2ca   :  { %1495 = vmatpush1.bf16.msra.mxu0 %v3438_v55  ;;  %v1212_v55 = vrot.slane %v4437_v34, %v3992_v63 }
 0x2cb   :  { %1496 = vmatprep.subr.bf16.mxu0 %v3443_v56  ;;  %v3464_v56 = vld [vmem:[%s5054_s3 + $0xd4] ss:$8 sps:$4 sm:$0xff]  }
 0x2ce   :  { %1497 = vmatpush1.bf16.msra.mxu0 %v3441_v42  ;;  %v1208_v42 = vld [vmem:[%s5058_s2] sm:$0x3] }
 0x2cf   :  { %1498 = vmatprep.subr.bf16.mxu0 %v3446_v1  ;;  %v1216_v1 = vrot.slane %v4442_v37, %v3992_v63 }
 0x2d2   :  { %1499 = vmatpush1.bf16.msra.mxu0 %v3444_v3  ;;  %v3462_v3 = vld [vmem:[%s5054_s3 + $0xd0] ss:$8 sps:$4 sm:$0xff]  }
 0x2d3   :  { %1500 = vmatprep.subr.bf16.mxu0 %v3449_v58  ;;  %v1217_v58 = vmul.f32 %v1212_v55, %v4018_v15 }
 0x2d6   :  { %1501 = vmatpush1.bf16.msra.mxu0 %v3447_v31  ;;  %v1223_v31 = vrot.slane %v1208_v42, %v3992_v63 }
 0x2d7   :  { %1502 = vmatprep.subr.bf16.mxu0 %v3452_v36  ;;  %v3467_v36 = vld [vmem:[%s5054_s3 + $0xe4] ss:$8 sps:$4 sm:$0xff]  }
 0x2da   :  { %1503 = vmatpush1.bf16.msra.mxu0 %v3450_v48  ;;  %v1218_v48 = vmul.f32 %v1216_v1, %v4018_v15  ;;  %v3465_v15 = vld [vmem:[%s5054_s3 + $0xe0] ss:$8 sps:$4 sm:$0xff]  }
 0x2db   :  { %1504 = vmatprep.subr.bf16.mxu0 %v3455_v46  ;;  %v1195_v46 = vrot.slane %v4437_v34, %v3998_v2 }
 0x2dd   :  { %v1200_v45 = vmul.f32 %v1195_v46, %v4020_v16  ;;  %v1183_v46 = vrot.slane %v4437_v34, %v3968_v57 }
 0x2de   :  { %1505 = vmatpush1.bf16.msra.mxu0 %v3453_v47  ;;  %v1227_v47 = vrot.slane %v1208_v42, %v3989_v62  ;;  %v3470_v42 = vld [vmem:[%s5054_s3 + $0xf4] ss:$8 sps:$4 sm:$0xff]  }
 0x2df   :  { %1506 = vmatprep.subr.bf16.mxu0 %v3458_v49  ;;  %v1235_v49 = vrot.slane %v4437_v34, %v3989_v62 }
 0x2e0   :  { %v1231_v39 = vadd.f32 %v1227_v47, %v1218_v48 }
 0x2e1   :  { %v1240_v35 = vmul.f32 %v1235_v49, %v4064_v50 }
 0x2e2   :  { %1507 = vmatpush1.bf16.msra.mxu0 %v3456_v52  ;;  %v1239_v52 = vrot.slane %v4442_v37, %v3989_v62 }
 0x2e3   :  { %1508 = vmatprep.subr.bf16.mxu0 %v3461_v38  ;;  %v1131_v38 = vld [vmem:[%s5058_s2] sm:$0x3] }
 0x2e4   :  { %v1151_v26 = vrot.slane %v1131_v38, %v3992_v63  ;;  %v1155_v9 = vrot.slane %v1131_v38, %v3989_v62  ;;  %v1241_v28 = vmul.f32 %v1239_v52, %v4064_v50  ;;  %v1187_v50 = vrot.slane %v4442_v37, %v3968_v57 }
 0x2e6   :  { %1509 = vmatpush1.bf16.msra.mxu0 %v3459_v54  ;;  %v1199_v54 = vrot.slane %v4442_v37, %v3998_v2 }
 0x2e7   :  { %1510 = vmatprep.subr.bf16.mxu0 %v3464_v56  ;;  %v1230_v56 = vadd.f32 %v1223_v31, %v1217_v58  ;;  %v3686_v58 = vld [vmem:[%s5097_s13 + $0x8] sm:$0xff] }
 0x2e8   :  { %v4497_v31 = vrot.slane %v3686_v58, %v3989_v62  ;;  %v4503_v0 = vrot.slane %v3686_v58, %v3998_v2  ;;  %v4509_v30 = vrot.slane %v3686_v58, %v3968_v57  ;;  %v4520_v58 = vrot.slane %v1744_v33, %v3992_v63 }
 0x2e9   :  { %v1242_v17 = vadd.f32 %v1240_v35, %v1230_v56  ;;  %v1201_v34 = vmul.f32 %v1199_v54, %v4020_v16 }
 0x2ea   :  { %1511 = vmatpush1.bf16.msra.mxu0 %v3462_v3  ;;  %v3685_v3 = vld [vmem:[%s5097_s13] sm:$0xff]  ;;  %5115 = vst [vmem:[#allocation19_spill] sm:$0xff] %v4503_v0  ;;  %v1850_v56 = vmul.f32 %v4497_v31, %v4078_v13 }
 0x2eb   :  { %1512 = vmatprep.subr.bf16.mxu0 %v3467_v36  ;;  %v4491_v32 = vrot.slane %v3685_v3, %v3989_v62  ;;  %v4500_v36 = vrot.slane %v3685_v3, %v3998_v2  ;;  %v4506_v7 = vrot.slane %v3685_v3, %v3968_v57  ;;  %v3468_v3 = vld [vmem:[%s5054_s3 + $0xf0] ss:$8 sps:$4 sm:$0xff]  }
 0x2ed   :  { %5114 = vst [vmem:[#allocation18_spill] sm:$0xff] %v4500_v36  ;;  %5116 = vst [vmem:[#allocation20_spill] sm:$0xff] %v4506_v7 }
 0x2ee   :  { %v1162_v27 = vpop.permute.xlu1 %1161  ;;  %v1135_v2 = vpop.permute.xlu0 %1134  ;;  %1513 = vmatpush1.bf16.msra.mxu0 %v3465_v15 }
 0x2ef   :  { %v1145_v48 = vmul.f32 %v1212_v55, %v1135_v2  ;;  %v1146_v47 = vmul.f32 %v1216_v1, %v1135_v2  ;;  %1514 = vmatprep.subr.bf16.mxu0 %v3470_v42  ;;  %v1839_v38 = vmul.f32 %v4500_v36, %v1162_v27  ;;  %v1840_v15 = vmul.f32 %v4503_v0, %v1162_v27 }
 0x2f0   :  { %v1835_v23 = vmul.f32 %v4506_v7, %v1135_v2  ;;  %v1836_v20 = vmul.f32 %v4509_v30, %v1135_v2  ;;  %v1172_v19 = vmul.f32 %v1235_v49, %v1162_v27  ;;  %v1173_v33 = vmul.f32 %v1239_v52, %v1162_v27 }
 0x2f1   :  { %v1158_v18 = vadd.f32 %v1151_v26, %v1145_v48  ;;  %v1159_v55 = vadd.f32 %v1155_v9, %v1146_v47  ;;  %v1243_v7 = vadd.f32 %v1241_v28, %v1231_v39  ;;  %v1849_v39 = vmul.f32 %v4491_v32, %v4078_v13 }
 0x2f2   :  { %v1712_v1 = vpop.permute.xlu0 %1711  ;;  %1515 = vmatpush1.bf16.msra.mxu0 %v3468_v3  ;;  %v1837_v37 = vadd.f32 %v1835_v23, %v4520_v58  ;;  %v1838_v42 = vadd.f32 %v1836_v20, %v4523_v22  ;;  %v5117_v23 = vrot.slane %v3865_v24, %v3854_v21 }
 0x2f3   :  { %v1174_v57 = vadd.f32 %v1172_v19, %v1158_v18  ;;  %v1175_v36 = vadd.f32 %v1173_v33, %v1159_v55  ;;  %v1714_v0 = vadd.f32 %v1712_v1, %v4351_v29  ;;  %v4537_v14 = vpop.permute.xlu1 %1177  ;;  %v5118_v18 = vrot.slane %v3870_v25, %v3854_v21 }
 0x2f4   :  { %v1188_v27 = vmul.f32 %v1183_v46, %v4537_v14  ;;  %v1189_v26 = vmul.f32 %v1187_v50, %v4537_v14  ;;  %v1841_v2 = vadd.f32 %v1839_v38, %v1837_v37  ;;  %v1842_v9 = vadd.f32 %v1840_v15, %v1838_v42 }
 0x2f5   :  { %v3051_v35 = vadd.f32 -1.0, %v1714_v0  ;;  %v4545_v49 = vmul.f32 %v5117_v23, %v4020_v16  ;;  %v4551_v28 = vmul.f32 %v5118_v18, %v4020_v16  ;;  %v5119_v38 = vmov 1   ;;  %v3474_v23 = vld [vmem:[%s5059_s5 + $0x8] sm:$0xff]   ;;  %v3475_v18 = vld [vmem:[%s5059_s5 + $0x50] sm:$0xff]  }
 0x2f6   :  { %v1190_v19 = vadd.f32 %v1188_v27, %v1174_v57  ;;  %v1191_v20 = vadd.f32 %v1189_v26, %v1175_v36  ;;  %v1254_v29 = vadd.f32 %v1242_v17, %v1188_v27  ;;  %v1255_v52 = vadd.f32 %v1243_v7, %v1189_v26 }
 0x2f7   :  { %v1716_v0 = vmul.f32 -0.125, %v3051_v35  ;;  %v1843_v54 = vadd.f32 %v1841_v2, %v4545_v49  ;;  %v1844_v24 = vadd.f32 %v1842_v9, %v4551_v28  ;;  %v3471_v2 = vld [vmem:[%s5059_s5 + $0x40] sm:$0xff]   ;;  %v3473_v35 = vld [vmem:[%s5059_s5 + $0x48] sm:$0xff]  }
 0x2f8   :  { %v1202_v3 = vadd.f32 %v1200_v45, %v1190_v19  ;;  %v1266_v48 = vadd.f32 %v1254_v29, %v1200_v45  ;;  %v1203_v25 = vadd.f32 %v1201_v34, %v1191_v20  ;;  %v1267_v47 = vadd.f32 %v1255_v52, %v1201_v34  ;;  %v3472_v9 = vld [vmem:[%s5059_s5] sm:$0xff]   ;;  %3195 = vmatprep.subr.bf16.mxu1 %v3471_v2  ;;  %v3477_v19 = vld [vmem:[%s5059_s5 + $0x58] sm:$0xff]  }
 0x2f9   :  { %1719 = vperm.xlu1 %3289, %v1716_v0   ;;  %v1847_v46 = vadd.f32 %v4085_v53, %v1843_v54  ;;  %v1848_v57 = vadd.f32 %v4088_v40, %v1844_v24  ;;  %v1853_v17 = vadd.f32 %v1843_v54, %v4054_v43  ;;  %v1854_v7 = vadd.f32 %v1844_v24, %v4058_v44  ;;  %v3478_v20 = vld [vmem:[%s5059_s5 + $0x18] sm:$0xff]   ;;  %v3479_v29 = vld [vmem:[%s5059_s5 + $0x60] sm:$0xff]   ;;  %v3481_v0 = vld [vmem:[%s5059_s5 + $0x68] sm:$0xff]  }
 0x2fa   :  { %3620 = vtanh.f32 %v1202_v3  ;;  %3196 = vmatpush3.bf16.msra.mxu1 %v3472_v9  ;;  %v3480_v52 = vld [vmem:[%s5059_s5 + $0x20] sm:$0xff]   ;;  %v3482_v54 = vld [vmem:[%s5059_s5 + $0x28] sm:$0xff]   ;;  %v3483_v24 = vld [vmem:[%s5059_s5 + $0x70] sm:$0xff]  }
 0x2fb   :  { %3622 = vtanh.f32 %v1266_v48  ;;  %v1851_v36 = vadd.f32 %v1849_v39, %v1847_v46  ;;  %v1852_v50 = vadd.f32 %v1850_v56, %v1848_v57  ;;  %3197 = vmatprep.subr.bf16.mxu1 %v3473_v35  ;;  %v3476_v39 = vld [vmem:[%s5059_s5 + $0x10] sm:$0xff]   ;;  %v3485_v3 = vld [vmem:[%s5059_s5 + $0x78] sm:$0xff]  }
 0x2fc   :  { %3624 = vtanh.f32 %v1203_v25  ;;  %v3484_v56 = vld [vmem:[%s5059_s5 + $0x30] sm:$0xff]   ;;  %v3486_v48 = vld [vmem:[%s5059_s5 + $0x38] sm:$0xff]  }
 0x2fd   :  { %3626 = vtanh.f32 %v1267_v47  ;;  %3290 = vset.pattern.permute.xlu1 %v5119_v38 }
 0x2fe   :  { %3628 = vtanh.f32 %v1851_v36  ;;  %3198 = vmatpush3.bf16.msra.mxu1 %v3474_v23 }
 0x2ff   :  { %3630 = vtanh.f32 %v1852_v50  ;;  %3199 = vmatprep.subr.bf16.mxu1 %v3475_v18 }
 0x300   :  { %3632 = vtanh.f32 %v1853_v17  ;;  %v4627_v17 = vld [vmem:[%s5060_s12] ss:$0 sm:$0xff] }
 0x301   :  { %3634 = vtanh.f32 %v1854_v7 }
 0x302   :  { %3200 = vmatpush3.bf16.msra.mxu1 %v3476_v39 }
 0x303   :  { %3201 = vmatprep.subr.bf16.mxu1 %v3477_v19 }
 0x304   :  { %v3621_v45 = vpop.eup %3620 }
 0x305   :  { %v3623_v53 = vpop.eup %3622 }
 0x306   :  { %v3625_v15 = vpop.eup %3624  ;;  %v1278_v33 = vpack.c.bf16 %v3623_v53, %v3621_v45  ;;  %3202 = vmatpush3.bf16.msra.mxu1 %v3478_v20 }
 0x307   :  { %v3627_v40 = vpop.eup %3626  ;;  %3203 = vmatprep.subr.bf16.mxu1 %v3479_v29 }
 0x308   :  { %v4564_v55 = vpop.eup %3628  ;;  %v1279_v1 = vpack.c.bf16 %v3627_v40, %v3625_v15  ;;  %v1312_v15 = vld [vmem:[%s5061_s4] sm:$0x3] }
 0x309   :  { %v4566_v34 = vpop.eup %3630  ;;  %v1317_v40 = vrot.slane %v1312_v15, %v3992_v63 }
 0x30a   :  { %v4568_v37 = vpop.eup %3632  ;;  %1516 = vmatprep.mubr.bf16.mxu0 %v1279_v1  ;;  %3204 = vmatpush3.bf16.msra.mxu1 %v3480_v52 }
 0x30b   :  { %v4570_v42 = vpop.eup %3634  ;;  %1517 = vmatmul.mubr.bf16.vlgmr.msra.gmra.mrb[8].mxu0 %v1278_v33  ;;  %v1881_v27 = vpack.c.bf16 %v4568_v37, %v4564_v55  ;;  %3205 = vmatprep.subr.bf16.mxu1 %v3481_v0  ;;  %v1321_v33 = vrot.slane %v1312_v15, %v3989_v62  ;;  %v3519_v55 = vld [vmem:[%s5053_s11 + $0x28] sm:$0xff]   ;;  %v3520_v37 = vld [vmem:[%s5053_s11 + $0x70] sm:$0xff]  }
 0x30c   :  { %v1882_v26 = vpack.c.bf16 %v4570_v42, %v4566_v34 }
 0x30e   :  { %3206 = vmatpush3.bf16.msra.mxu1 %v3482_v54 }
 0x30f   :  { %3207 = vmatprep.subr.bf16.mxu1 %v3483_v24 }
 0x312   :  { %3208 = vmatpush3.bf16.msra.mxu1 %v3484_v56  ;;  %v3487_v56 = vld [vmem:[%s5051_s9] ss:$8 sps:$4 sm:$0xff]  }
 0x313   :  { %3209 = vmatprep.subr.bf16.mxu1 %v3485_v3  ;;  %v3489_v3 = vld [vmem:[%s5051_s9 + $0x4] ss:$8 sps:$4 sm:$0xff]  }
 0x316   :  { %3210 = vmatpush3.bf16.msra.mxu1 %v3486_v48  ;;  %v3687_v48 = vld [vmem:[%s5051_s9 + $0x14] ss:$8 sps:$4 sm:$0xff]  }
 0x317   :  { %2087 = vmatprep.subr.bf16.mxu1 %v3489_v3 }
 0x388   :  { %v3189_v25 = vpop.f32.mrb[4].mxu0 }
 0x389   :  { %v3190_v47 = vpop.f32.mrb[5].mxu0 }
 0x38a   :  { %v3191_v46 = vadd.f32 %v3190_v47, %v3189_v25  ;;  %v3192_v57 = vpop.f32.mrb[6].mxu0 }
 0x38b   :  { %v3193_v7 = vpop.f32.mrb[7].mxu0 }
 0x38c   :  { %v3194_v36 = vadd.f32 %v3193_v7, %v3192_v57  ;;  %v4630_v50 = vadd.f32 %v3191_v46, %v4627_v17 }
 0x38e   :  { %v4633_v45 = vadd.f32 %v3194_v36, %v4627_v17 }
 0x390   :  { %v1126_v53 = vsub.f32 %v4630_v50, %v4633_v45  ;;  %v3495_v50 = vld [vmem:[%s5051_s9 + $0xb4] ss:$8 sps:$4 sm:$0xff]  }
 0x3de   :  { %v1518_v1 = vpop.f32.mrb[8].mxu0 }
 0x3df   :  { %v1519_v2 = vadd.f32 %v1518_v1, %v1317_v40  ;;  %v1520_v9 = vpop.f32.mrb[9].mxu0  ;;  %v3492_v1 = vld [vmem:[%s5051_s9 + $0xa4] ss:$8 sps:$4 sm:$0xff]  }
 0x3e0   :  { %v1521_v35 = vadd.f32 %v1520_v9, %v1321_v33  ;;  %v1522_v23 = vpop.f32.mrb[10].mxu0  ;;  %v3698_v9 = vmov 5  }
 0x3e1   :  { %3636 = vtanh.f32 %v1519_v2  ;;  %v1523_v18 = vadd.f32 %v1522_v23, %v1317_v40  ;;  %v1524_v39 = vpop.f32.mrb[11].mxu0  ;;  %v3490_v2 = vld [vmem:[%s5051_s9 + $0xa0] ss:$8 sps:$4 sm:$0xff]  }
 0x3e2   :  { %3638 = vtanh.f32 %v1521_v35  ;;  %v1525_v19 = vadd.f32 %v1524_v39, %v1321_v33  ;;  %v3699_v35 = vmov 4   ;;  %v5126_v23 = vld [vmem:[#allocation16_spill] sm:$0xff]  ;;  %v5127_v39 = vmov 0  }
 0x3e3   :  { %3640 = vtanh.f32 %v1523_v18  ;;  %v4705_v45 = vmul.f32 %v5126_v23, %v5126_v23 }
 0x3e4   :  { %3642 = vtanh.f32 %v1525_v19  ;;  %v3496_v19 = vld [vmem:[%s5051_s9 + $0xc0] ss:$8 sps:$4 sm:$0xff]  }
 0x3eb   :  { %v3637_v20 = vpop.eup %3636 }
 0x3ec   :  { %v3639_v29 = vpop.eup %3638 }
 0x3ed   :  { %v3641_v52 = vpop.eup %3640 }
 0x3ee   :  { %v3643_v0 = vpop.eup %3642  ;;  %v1531_v54 = vpack.c.bf16 %v3641_v52, %v3637_v20  ;;  %v3499_v20 = vld [vmem:[%s5051_s9 + $0xd0] ss:$8 sps:$4 sm:$0xff]   ;;  %v3504_v52 = vld [vmem:[%s5051_s9 + $0xe4] ss:$8 sps:$4 sm:$0xff]  }
 0x3ef   :  { %v1532_v24 = vpack.c.bf16 %v3643_v0, %v3639_v29  ;;  %v3501_v29 = vld [vmem:[%s5051_s9 + $0xd4] ss:$8 sps:$4 sm:$0xff]   ;;  %v3502_v0 = vld [vmem:[%s5051_s9 + $0xe0] ss:$8 sps:$4 sm:$0xff]  }
 0x3f1   :  { %1700 = vmatprep.mubr.bf16.mxu1 %v1532_v24  ;;  %v3505_v24 = vld [vmem:[%s5051_s9 + $0xf0] ss:$8 sps:$4 sm:$0xff]  }
 0x3f2   :  { %1701 = vmatmul.mubr.bf16.vlgmr.msra.gmra.mrb[8].mxu1 %v1531_v54  ;;  %v3507_v54 = vld [vmem:[%s5051_s9 + $0xf4] ss:$8 sps:$4 sm:$0xff]  }
 0x3f3   :  { %2088 = vmatpush1.bf16.msra.mxu1 %v3487_v56 }
 0x3f4   :  { %2089 = vmatprep.subr.bf16.mxu1 %v3687_v48  ;;  %v5128_v48 = vld [vmem:[#allocation20_spill] sm:$0xff] }
 0x3f7   :  { %2090 = vmatpush1.bf16.msra.mxu1 %v4146_v59  ;;  %v5120_v59 = vld [vmem:[#allocation11_spill] sm:$0xff] }
 0x3f8   :  { %2091 = vmatprep.subr.bf16.mxu1 %v4151_v41  ;;  %v5121_v41 = vld [vmem:[#allocation12_spill] sm:$0xff] }
 0x3fb   :  { %2092 = vmatpush1.bf16.msra.mxu1 %v4157_v60  ;;  %v5122_v60 = vld [vmem:[#allocation13_spill] sm:$0xff] }
 0x3fc   :  { %2093 = vmatprep.subr.bf16.mxu1 %v4163_v61  ;;  %v5123_v61 = vld [vmem:[#allocation14_spill] sm:$0xff] }
 0x3ff   :  { %2094 = vmatpush1.bf16.msra.mxu1 %v4169_v51  ;;  %v5124_v51 = vld [vmem:[#allocation15_spill] sm:$0xff] }
 0x400   :  { %2095 = vmatprep.subr.bf16.mxu1 %v4175_v4  ;;  %v1720_v4 = vpop.permute.xlu1 %1719 }
 0x403   :  { %2096 = vmatpush1.bf16.msra.mxu1 %v4181_v5  ;;  %v5125_v5 = vld [vmem:[#allocation17_spill] sm:$0xff] }
 0x404   :  { %2097 = vmatprep.subr.bf16.mxu1 %v4187_v6  ;;  %v1722_v6 = vmul.f32 %v1720_v4, %v5125_v5 }
 0x407   :  { %2098 = vmatpush1.bf16.msra.mxu1 %v4193_v8 }
 0x408   :  { %2099 = vmatprep.subr.bf16.mxu1 %v4199_v10  ;;  %v3034_v10 = vld [vmem:[%s5062_s6] ss:$0 sm:$0xff] }
 0x40b   :  { %2100 = vmatpush1.bf16.msra.mxu1 %v4205_v11 }
 0x40c   :  { %2101 = vmatprep.subr.bf16.mxu1 %v4211_v12  ;;  %v1723_v12 = vmul.f32 %v1722_v6, %v4537_v14 }
 0x40e   :  { %v1724_v36 = vadd.f32 %v1723_v12, %v5125_v5 }
 0x40f   :  { %2102 = vmatpush1.bf16.msra.mxu1 %v5120_v59 }
 0x410   :  { %2103 = vmatprep.subr.bf16.mxu1 %v5121_v41 }
 0x413   :  { %2104 = vmatpush1.bf16.msra.mxu1 %v5122_v60  ;;  %v5129_v60 = vld [vmem:[#allocation18_spill] sm:$0xff] }
 0x414   :  { %2105 = vmatprep.subr.bf16.mxu1 %v5123_v61 }
 0x417   :  { %2106 = vmatpush1.bf16.msra.mxu1 %v5124_v51  ;;  %v5130_v51 = vld [vmem:[#allocation19_spill] sm:$0xff] }
 0x418   :  { %2107 = vmatprep.subr.bf16.mxu1 %v3492_v1 }
 0x41b   :  { %2108 = vmatpush1.bf16.msra.mxu1 %v3490_v2  ;;  %v3689_v2 = vld [vmem:[%s5098_s0 + $0x8] sm:$0xff] }
 0x41c   :  { %2109 = vmatprep.subr.bf16.mxu1 %v3495_v50 }
 0x4c5   :  { %v3211_v8 = vpop.f32.mrb[8].mxu1 }
 0x4c6   :  { %v3212_v11 = vpop.f32.mrb[9].mxu1 }
 0x4c7   :  { %v3213_v25 = vadd.f32 %v3212_v11, %v3211_v8  ;;  %v3214_v47 = vpop.f32.mrb[10].mxu1 }
 0x4c8   :  { %v3215_v46 = vpop.f32.mrb[11].mxu1 }
 0x4c9   :  { %v1703_v57 = vadd.f32 %v3213_v25, %v3034_v10  ;;  %v3216_v7 = vadd.f32 %v3215_v46, %v3214_v47  ;;  %v2344_v47 = vld [vmem:[%s5049_s14] sm:$0x3] }
 0x4cb   :  { %v1725_v15 = vmul.f32 %v1703_v57, %v4537_v14  ;;  %v4675_v40 = vadd.f32 %v3216_v7, %v3034_v10  ;;  %v1127_v14 = vmul.f32 %v1126_v53, %v4020_v16  ;;  %v3493_v53 = vld [vmem:[%s5051_s9 + $0xb0] ss:$8 sps:$4 sm:$0xff]   ;;  %v3688_v57 = vld [vmem:[%s5098_s0] sm:$0xff] }
 0x4cc   :  { %2110 = vmatpush1.bf16.msra.mxu1 %v3493_v53  ;;  %v5131_v7 = vld [vmem:[#allocation5_spill] sm:$0xff] }
 0x4cd   :  { %v4677_v33 = vadd.f32 %v1725_v15, %v1724_v36  ;;  %v4694_v18 = vadd.f32 %v5126_v23, %v1127_v14  ;;  %v2357_v14 = vrot.slane %v3689_v2, %v5131_v7 }
 0x4cf   :  { %1774 = vperm.xlu1 %3290, %v4677_v33   ;;  %1747 = vperm.xlu0 %3286, %v4677_v33  }
 0x4d3   :  { %3292 = vset.pattern.permute.xlu1 %v3698_v9  ;;  %3291 = vset.pattern.permute.xlu0 %v3699_v35  ;;  %v2364_v9 = vrot.slane %v2344_v47, %v3992_v63  ;;  %v5132_v35 = vld [vmem:[#allocation6_spill] sm:$0xff] }
 0x4d4   :  { %1818 = vperm.xlu1 %3292, %v5126_v23   ;;  %1802 = vperm.xlu0 %3291, %v5126_v23   ;;  %v2380_v23 = vrot.slane %v3688_v57, %v5132_v35 }
 0x4d8   :  { %3293 = vset.pattern.permute.xlu1 %v5127_v39  ;;  %3294 = vset.pattern.permute.xlu0 %v5119_v38  ;;  %v3498_v38 = vld [vmem:[%s5051_s9 + $0xc4] ss:$8 sps:$4 sm:$0xff]  }
 0x4d9   :  { %2347 = vperm.xlu1 %3293, %v4694_v18   ;;  %2374 = vperm.xlu0 %3294, %v4694_v18  }
 0x4da   :  { %2111 = vmatprep.subr.bf16.mxu1 %v3498_v38 }
 0x4db   :  { %2112 = vmatpush1.bf16.msra.mxu1 %v3496_v19 }
 0x4dc   :  { %2113 = vmatprep.subr.bf16.mxu1 %v3501_v29 }
 0x4dd   :  { %1729 = vrot.lane.b32.xlu1 %v4705_v45, %s3697_s27 }
 0x4df   :  { %2114 = vmatpush1.bf16.msra.mxu1 %v3499_v20 }
 0x4e0   :  { %2115 = vmatprep.subr.bf16.mxu1 %v3504_v52 }
 0x4e3   :  { %2116 = vmatpush1.bf16.msra.mxu1 %v3502_v0 }
 0x4e4   :  { %2117 = vmatprep.subr.bf16.mxu1 %v3507_v54 }
 0x4e7   :  { %2118 = vmatpush1.bf16.msra.mxu1 %v3505_v24 }
 0x54e   :  { %v1775_v56 = vpop.permute.xlu1 %1774  ;;  %v1748_v3 = vpop.permute.xlu0 %1747 }
 0x54f   :  { %v1758_v59 = vmul.f32 %v5128_v48, %v1748_v3  ;;  %v1759_v41 = vmul.f32 %v4509_v30, %v1748_v3  ;;  %v1785_v61 = vmul.f32 %v5129_v60, %v1775_v56  ;;  %v1786_v4 = vmul.f32 %v5130_v51, %v1775_v56  ;;  %v5133_v56 = vld [vmem:[#allocation3_spill] sm:$0xff] }
 0x550   :  { %v5134_v3 = vrot.slane %v5133_v56, %v3854_v21  ;;  %v1915_v56 = vld [vmem:[%s5056_s10] sm:$0x3]  ;;  %s3702_s10 = smov 2  }
 0x551   :  { %v1771_v6 = vadd.f32 %v4520_v58, %v1758_v59  ;;  %v1772_v8 = vadd.f32 %v4523_v22, %v1759_v41  ;;  %v2353_v58 = vrot.slane %v3688_v57, %v5131_v7  ;;  %v2416_v59 = vrot.slane %v3688_v57, %v3989_v62 }
 0x552   :  { %v2397_v48 = vmul.f32 %v5134_v3, %v4020_v16  ;;  %v1920_v3 = vrot.slane %v1915_v56, %v3992_v63 }
 0x553   :  { %v1787_v10 = vadd.f32 %v1785_v61, %v1771_v6  ;;  %v1788_v11 = vadd.f32 %v1786_v4, %v1772_v8  ;;  %v1819_v12 = vpop.permute.xlu1 %1818  ;;  %v1803_v25 = vpop.permute.xlu0 %1802  ;;  %v5135_v61 = vld [vmem:[#allocation4_spill] sm:$0xff]  ;;  %v2420_v6 = vrot.slane %v3689_v2, %v3989_v62 }
 0x554   :  { %v1813_v46 = vmul.f32 %v4054_v43, %v1803_v25  ;;  %v1814_v30 = vmul.f32 %v4058_v44, %v1803_v25  ;;  %v1829_v22 = vmul.f32 %v4491_v32, %v1819_v12  ;;  %v1830_v36 = vmul.f32 %v4497_v31, %v1819_v12 }
 0x555   :  { %v1799_v15 = vadd.f32 %v4545_v49, %v1787_v10  ;;  %v1800_v1 = vadd.f32 %v4551_v28, %v1788_v11  ;;  %v2368_v49 = vrot.slane %v2344_v47, %v3989_v62  ;;  %v2384_v28 = vrot.slane %v3689_v2, %v5132_v35  ;;  %v5137_v47 = vld [vmem:[#allocation9_spill] sm:$0xff]  ;;  %v3508_v35 = vld [vmem:[%s5053_s11 + $0x40] sm:$0xff]  }
 0x556   :  { %v5136_v51 = vrot.slane %v5135_v61, %v3854_v21  ;;  %v2421_v25 = vmul.f32 %v2416_v59, %v4078_v13  ;;  %3217 = vmatprep.subr.bf16.mxu0 %v3508_v35  ;;  %v3532_v35 = vld [vmem:[%s5096_s22 + $0x24] ss:$8 sps:$4 sm:$0xff]  }
 0x557   :  { %v1833_v39 = vadd.f32 %v4054_v43, %v1799_v15  ;;  %v1834_v32 = vadd.f32 %v4058_v44, %v1800_v1  ;;  %v1815_v50 = vadd.f32 %v1813_v46, %v1799_v15  ;;  %v1816_v31 = vadd.f32 %v1814_v30, %v1800_v1  ;;  %v5138_v30 = vld [vmem:[#allocation7_spill] sm:$0xff] }
 0x558   :  { %v2348_v53 = vpop.permute.xlu1 %2347  ;;  %v2375_v38 = vpop.permute.xlu0 %2374  ;;  %v2398_v4 = vmul.f32 %v5136_v51, %v4020_v16 }
 0x559   :  { %3644 = vtanh.f32 %v1833_v39  ;;  %v1831_v19 = vadd.f32 %v1829_v22, %v1815_v50  ;;  %v1832_v20 = vadd.f32 %v1830_v36, %v1816_v31  ;;  %v2358_v29 = vmul.f32 %v2353_v58, %v2348_v53  ;;  %v5139_v58 = vld [vmem:[#allocation10_spill] sm:$0xff]  ;;  %v5140_v36 = vld [vmem:[#allocation8_spill] sm:$0xff] }
 0x55a   :  { %3646 = vtanh.f32 %v1834_v32  ;;  %v2359_v52 = vmul.f32 %v2357_v14, %v2348_v53  ;;  %v2385_v54 = vmul.f32 %v2380_v23, %v2375_v38  ;;  %v2386_v44 = vmul.f32 %v2384_v28, %v2375_v38  ;;  %v3510_v23 = vld [vmem:[%s5053_s11 + $0x48] sm:$0xff]   ;;  %v3513_v53 = vld [vmem:[%s5053_s11 + $0x10] sm:$0xff]   ;;  %v3514_v38 = vld [vmem:[%s5053_s11 + $0x58] sm:$0xff]  }
 0x55b   :  { %3648 = vtanh.f32 %v1831_v19  ;;  %v2371_v0 = vadd.f32 %v2364_v9, %v2358_v29  ;;  %v3511_v31 = vld [vmem:[%s5053_s11 + $0x8] sm:$0xff]  }
 0x55c   :  { %3650 = vtanh.f32 %v1832_v20  ;;  %v2372_v43 = vadd.f32 %v2368_v49, %v2359_v52  ;;  %v1730_v24 = vpop.permute.xlu1 %1729  ;;  %v3512_v49 = vld [vmem:[%s5053_s11 + $0x50] sm:$0xff]   ;;  %v3516_v52 = vld [vmem:[%s5053_s11 + $0x60] sm:$0xff]  }
 0x55d   :  { %v2387_v41 = vadd.f32 %v2385_v54, %v2371_v0  ;;  %v1732_v60 = vadd.f32 %v1730_v24, %v4705_v45  ;;  %v2422_v45 = vmul.f32 %v2420_v6, %v4078_v13  ;;  %v3509_v13 = vld [vmem:[%s5053_s11] sm:$0xff]   ;;  %v3518_v54 = vld [vmem:[%s5053_s11 + $0x68] sm:$0xff]  }
 0x55e   :  { %v2388_v8 = vadd.f32 %v2386_v44, %v2372_v43  ;;  %3218 = vmatpush3.bf16.msra.mxu0 %v3509_v13  ;;  %v3517_v0 = vld [vmem:[%s5053_s11 + $0x20] sm:$0xff]   ;;  %v3522_v43 = vld [vmem:[%s5053_s11 + $0x78] sm:$0xff]  }
 0x55f   :  { %v2399_v10 = vadd.f32 %v2397_v48, %v2387_v41  ;;  %v3052_v11 = vadd.f32 -1.0, %v1732_v60  ;;  %3219 = vmatprep.subr.bf16.mxu0 %v3510_v23  ;;  %v3523_v44 = vld [vmem:[%s5053_s11 + $0x38] sm:$0xff]   ;;  %v3526_v24 = vld [vmem:[%s5096_s22 + $0x4] ss:$8 sps:$4 sm:$0xff]   ;;  %v1924_v48 = vrot.slane %v1915_v56, %v3989_v62 }
 0x560   :  { %v2400_v12 = vadd.f32 %v2398_v4, %v2388_v8  ;;  %v3557_v56 = vld [vmem:[%s5096_s22 + $0xb0] ss:$8 sps:$4 sm:$0xff]  }
 0x561   :  { %v2411_v46 = vadd.f32 %v5137_v47, %v2399_v10  ;;  %v2425_v57 = vadd.f32 %v5138_v30, %v2399_v10  ;;  %v1734_v7 = vmul.f32 -0.125, %v3052_v11 }
 0x562   :  { %v2412_v22 = vadd.f32 %v5139_v58, %v2400_v12  ;;  %v2426_v21 = vadd.f32 %v5140_v36, %v2400_v12  ;;  %3220 = vmatpush3.bf16.msra.mxu0 %v3511_v31  ;;  %v3535_v31 = vld [vmem:[%s5096_s22 + $0x34] ss:$8 sps:$4 sm:$0xff]  }
 0x563   :  { %v3645_v15 = vpop.eup %3644  ;;  %v2423_v1 = vadd.f32 %v2421_v25, %v2411_v46  ;;  %3652 = vtanh.f32 %v2425_v57  ;;  %1737 = vperm.xlu1 %3293, %v1734_v7   ;;  %3221 = vmatprep.subr.bf16.mxu0 %v3512_v49  ;;  %v3533_v49 = vld [vmem:[%s5096_s22 + $0x30] ss:$8 sps:$4 sm:$0xff]  }
 0x564   :  { %v3647_v2 = vpop.eup %3646  ;;  %v2424_v14 = vadd.f32 %v2422_v45, %v2412_v22  ;;  %3654 = vtanh.f32 %v2426_v21 }
 0x565   :  { %v3649_v9 = vpop.eup %3648  ;;  %3656 = vtanh.f32 %v2423_v1  ;;  %v3529_v1 = vld [vmem:[%s5096_s22 + $0x14] ss:$8 sps:$4 sm:$0xff]  }
 0x566   :  { %v3651_v39 = vpop.eup %3650  ;;  %3658 = vtanh.f32 %v2424_v14  ;;  %v1879_v32 = vpack.c.bf16 %v3645_v15, %v3649_v9  ;;  %3222 = vmatpush3.bf16.msra.mxu0 %v3513_v53  ;;  %v3524_v15 = vld [vmem:[%s5096_s22] ss:$8 sps:$4 sm:$0xff]   ;;  %v3527_v14 = vld [vmem:[%s5096_s22 + $0x10] ss:$8 sps:$4 sm:$0xff]   ;;  %v3538_v53 = vld [vmem:[%s5096_s22 + $0x44] ss:$8 sps:$4 sm:$0xff]  }
 0x567   :  { %v1880_v50 = vpack.c.bf16 %v3647_v2, %v3651_v39  ;;  %3223 = vmatprep.subr.bf16.mxu0 %v3514_v38  ;;  %v3536_v38 = vld [vmem:[%s5096_s22 + $0x40] ss:$8 sps:$4 sm:$0xff]  }
 0x569   :  { %2119 = vmatprep.mubr.bf16.mxu1 %v1880_v50  ;;  %v3530_v50 = vld [vmem:[%s5096_s22 + $0x20] ss:$8 sps:$4 sm:$0xff]  }
 0x56a   :  { %2120 = vmatmul.mubr.bf16.vlgmr.msra.gmra.mrb[12].mxu1 %v1879_v32 }
 0x56b   :  { %2129 = vmatprep.mubr.bf16.mxu1 %v1882_v26  ;;  %v3515_v26 = vld [vmem:[%s5053_s11 + $0x18] sm:$0xff]  }
 0x56c   :  { %3224 = vmatpush3.bf16.msra.mxu0 %v3515_v26  ;;  %v3542_v26 = vld [vmem:[%s5096_s22 + $0x60] ss:$8 sps:$4 sm:$0xff]  }
 0x56d   :  { %v4803_v28 = vpop.eup %3652  ;;  %3225 = vmatprep.subr.bf16.mxu0 %v3516_v52  ;;  %v3547_v52 = vld [vmem:[%s5096_s22 + $0x74] ss:$8 sps:$4 sm:$0xff]  }
 0x56e   :  { %v4808_v19 = vpop.eup %3654 }
 0x56f   :  { %v4810_v20 = vpop.eup %3656 }
 0x570   :  { %v4812_v29 = vpop.eup %3658  ;;  %v2439_v34 = vpack.c.bf16 %v4803_v28, %v4810_v20  ;;  %3226 = vmatpush3.bf16.msra.mxu0 %v3517_v0  ;;  %v3545_v0 = vld [vmem:[%s5096_s22 + $0x70] ss:$8 sps:$4 sm:$0xff]  }
 0x571   :  { %v2440_v42 = vpack.c.bf16 %v4808_v19, %v4812_v29  ;;  %3227 = vmatprep.subr.bf16.mxu0 %v3518_v54  ;;  %v3541_v19 = vld [vmem:[%s5096_s22 + $0x54] ss:$8 sps:$4 sm:$0xff]   ;;  %v3539_v29 = vld [vmem:[%s5096_s22 + $0x50] ss:$8 sps:$4 sm:$0xff]   ;;  %v3550_v54 = vld [vmem:[%s5096_s22 + $0x84] ss:$8 sps:$4 sm:$0xff]  }
 0x572   :  { %2130 = vmatmul.mubr.bf16.gmra.mrb[16].mxu1 %v1881_v27  ;;  %v3521_v27 = vld [vmem:[%s5053_s11 + $0x30] sm:$0xff]  }
 0x573   :  { %v3576_v28 = vld [vmem:[%s5048_s17 + $0x50] sm:$0xff]  }
 0x574   :  { %3228 = vmatpush3.bf16.msra.mxu0 %v3519_v55  ;;  %v3548_v55 = vld [vmem:[%s5096_s22 + $0x80] ss:$8 sps:$4 sm:$0xff]   ;;  %v3577_v20 = vld [vmem:[%s5048_s17 + $0x10] sm:$0xff]  }
 0x575   :  { %3229 = vmatprep.subr.bf16.mxu0 %v3520_v37  ;;  %v3553_v37 = vld [vmem:[%s5096_s22 + $0x94] ss:$8 sps:$4 sm:$0xff]  }
 0x578   :  { %3230 = vmatpush3.bf16.msra.mxu0 %v3521_v27  ;;  %v3551_v27 = vld [vmem:[%s5096_s22 + $0x90] ss:$8 sps:$4 sm:$0xff]  }
 0x579   :  { %3231 = vmatprep.subr.bf16.mxu0 %v3522_v43  ;;  %v3556_v43 = vld [vmem:[%s5096_s22 + $0xa4] ss:$8 sps:$4 sm:$0xff]  }
 0x57c   :  { %3232 = vmatpush3.bf16.msra.mxu0 %v3523_v44  ;;  %v3554_v44 = vld [vmem:[%s5096_s22 + $0xa0] ss:$8 sps:$4 sm:$0xff]  }
 0x57d   :  { %2645 = vmatprep.subr.bf16.mxu0 %v3526_v24  ;;  %v3559_v24 = vld [vmem:[%s5096_s22 + $0xb4] ss:$8 sps:$4 sm:$0xff]  }
 0x63d   :  { %v2121_v59 = vpop.f32.mrb[12].mxu1 }
 0x63e   :  { %v2122_v41 = vadd.f32 %v2121_v59, %v1920_v3  ;;  %v2123_v60 = vpop.f32.mrb[13].mxu1  ;;  %v3565_v59 = vld [vmem:[%s5096_s22 + $0xd4] ss:$8 sps:$4 sm:$0xff]  }
 0x63f   :  { %v2124_v61 = vadd.f32 %v2123_v60, %v1924_v48  ;;  %v2125_v51 = vpop.f32.mrb[14].mxu1  ;;  %v3568_v60 = vld [vmem:[%s5096_s22 + $0xe4] ss:$8 sps:$4 sm:$0xff]  }
 0x640   :  { %3660 = vtanh.f32 %v2122_v41  ;;  %v2126_v4 = vadd.f32 %v2125_v51, %v1920_v3  ;;  %v2127_v6 = vpop.f32.mrb[15].mxu1  ;;  %v3563_v41 = vld [vmem:[%s5096_s22 + $0xd0] ss:$8 sps:$4 sm:$0xff]   ;;  %v3571_v51 = vld [vmem:[%s5096_s22 + $0xf4] ss:$8 sps:$4 sm:$0xff]  }
 0x641   :  { %3662 = vtanh.f32 %v2124_v61  ;;  %v2128_v8 = vadd.f32 %v2127_v6, %v1924_v48  ;;  %v3566_v61 = vld [vmem:[%s5096_s22 + $0xe0] ss:$8 sps:$4 sm:$0xff]  }
 0x642   :  { %3664 = vtanh.f32 %v2126_v4  ;;  %v3569_v4 = vld [vmem:[%s5096_s22 + $0xf0] ss:$8 sps:$4 sm:$0xff]   ;;  %v3572_v6 = vld [vmem:[%s5048_s17 + $0x40] sm:$0xff]  }
 0x643   :  { %3666 = vtanh.f32 %v2128_v8  ;;  %v3573_v8 = vld [vmem:[%s5048_s17] sm:$0xff]   ;;  %3245 = vmatprep.subr.bf16.mxu1 %v3572_v6 }
 0x644   :  { %3246 = vmatpush3.bf16.msra.mxu1 %v3573_v8 }
 0x645   :  { %v2131_v10 = vpop.f32.mrb[16].mxu1 }
 0x646   :  { %v2132_v11 = vadd.f32 %v2131_v10, %v1920_v3  ;;  %v2133_v12 = vpop.f32.mrb[17].mxu1  ;;  %v3574_v10 = vld [vmem:[%s5048_s17 + $0x48] sm:$0xff]  }
 0x647   :  { %v2134_v25 = vadd.f32 %v2133_v12, %v1924_v48  ;;  %v2135_v47 = vpop.f32.mrb[18].mxu1  ;;  %3247 = vmatprep.subr.bf16.mxu1 %v3574_v10  ;;  %v3579_v12 = vld [vmem:[%s5048_s17 + $0x18] sm:$0xff]  }
 0x648   :  { %3668 = vtanh.f32 %v2132_v11  ;;  %v2136_v46 = vadd.f32 %v2135_v47, %v1920_v3  ;;  %v2137_v30 = vpop.f32.mrb[19].mxu1  ;;  %v3562_v3 = vld [vmem:[%s5096_s22 + $0xc4] ss:$8 sps:$4 sm:$0xff]  }
 0x649   :  { %3670 = vtanh.f32 %v2134_v25  ;;  %v2138_v57 = vadd.f32 %v2137_v30, %v1924_v48  ;;  %v3560_v48 = vld [vmem:[%s5096_s22 + $0xc0] ss:$8 sps:$4 sm:$0xff]  }
 0x64a   :  { %v3661_v7 = vpop.eup %3660  ;;  %3672 = vtanh.f32 %v2136_v46  ;;  %v3575_v11 = vld [vmem:[%s5048_s17 + $0x8] sm:$0xff]   ;;  %v3580_v25 = vld [vmem:[%s5048_s17 + $0x60] sm:$0xff]  }
 0x64b   :  { %v3663_v45 = vpop.eup %3662  ;;  %3674 = vtanh.f32 %v2138_v57  ;;  %3248 = vmatpush3.bf16.msra.mxu1 %v3575_v11  ;;  %v3581_v47 = vld [vmem:[%s5048_s17 + $0x20] sm:$0xff]   ;;  %v3582_v46 = vld [vmem:[%s5048_s17 + $0x68] sm:$0xff]   ;;  %v3584_v57 = vld [vmem:[%s5048_s17 + $0x70] sm:$0xff]  }
 0x64c   :  { %v3665_v58 = vpop.eup %3664  ;;  %3249 = vmatprep.subr.bf16.mxu1 %v3576_v28  ;;  %v3583_v30 = vld [vmem:[%s5048_s17 + $0x28] sm:$0xff]   ;;  %v1738_v28 = vpop.permute.xlu1 %1737 }
 0x64d   :  { %v3667_v22 = vpop.eup %3666  ;;  %v2148_v36 = vpack.c.bf16 %v3665_v58, %v3661_v7  ;;  %v3585_v7 = vld [vmem:[%s5048_s17 + $0x30] sm:$0xff]   ;;  %v3587_v58 = vld [vmem:[%s5048_s17 + $0x38] sm:$0xff]  }
 0x64e   :  { %v2149_v21 = vpack.c.bf16 %v3667_v22, %v3663_v45  ;;  %v3586_v45 = vld [vmem:[%s5048_s17 + $0x78] sm:$0xff]  }
 0x64f   :  { %3250 = vmatpush3.bf16.msra.mxu1 %v3577_v20 }
 0x650   :  { %2319 = vmatprep.mubr.bf16.mxu0 %v2149_v21 }
 0x651   :  { %2320 = vmatmul.mubr.bf16.vlgmr.msra.gmra.mrb[12].mxu0 %v2148_v36 }
 0x652   :  { %v3669_v2 = vpop.eup %3668  ;;  %2646 = vmatpush1.bf16.msra.mxu0 %v3524_v15 }
 0x653   :  { %v3671_v9 = vpop.eup %3670  ;;  %2647 = vmatprep.subr.bf16.mxu0 %v3529_v1 }
 0x654   :  { %v3673_v13 = vpop.eup %3672 }
 0x655   :  { %v3675_v23 = vpop.eup %3674  ;;  %v2150_v39 = vpack.c.bf16 %v3673_v13, %v3669_v2 }
 0x656   :  { %2648 = vmatpush1.bf16.msra.mxu0 %v3527_v14  ;;  %v2151_v32 = vpack.c.bf16 %v3675_v23, %v3671_v9 }
 0x657   :  { %2649 = vmatprep.subr.bf16.mxu0 %v3532_v35 }
 0x658   :  { %2327 = vmatprep.mubr.bf16.mxu0 %v2151_v32 }
 0x659   :  { %2328 = vmatmul.mubr.bf16.gmra.mrb[16].mxu0 %v2150_v39 }
 0x65a   :  { %2650 = vmatpush1.bf16.msra.mxu0 %v3530_v50  ;;  %2677 = vmatprep.mubr.bf16.mxu0 %v2440_v42  ;;  %v3544_v42 = vld [vmem:[%s5096_s22 + $0x64] ss:$8 sps:$4 sm:$0xff]  }
 0x65b   :  { %2651 = vmatprep.subr.bf16.mxu0 %v3535_v31 }
 0x65e   :  { %2652 = vmatpush1.bf16.msra.mxu0 %v3533_v49 }
 0x65f   :  { %2653 = vmatprep.subr.bf16.mxu0 %v3538_v53 }
 0x662   :  { %2654 = vmatpush1.bf16.msra.mxu0 %v3536_v38 }
 0x663   :  { %2655 = vmatprep.subr.bf16.mxu0 %v3541_v19 }
 0x666   :  { %2656 = vmatpush1.bf16.msra.mxu0 %v3539_v29 }
 0x667   :  { %2657 = vmatprep.subr.bf16.mxu0 %v3544_v42 }
 0x66a   :  { %2658 = vmatpush1.bf16.msra.mxu0 %v3542_v26 }
 0x66b   :  { %2659 = vmatprep.subr.bf16.mxu0 %v3547_v52 }
 0x66e   :  { %2660 = vmatpush1.bf16.msra.mxu0 %v3545_v0 }
 0x66f   :  { %2661 = vmatprep.subr.bf16.mxu0 %v3550_v54 }
 0x672   :  { %2662 = vmatpush1.bf16.msra.mxu0 %v3548_v55 }
 0x673   :  { %2663 = vmatprep.subr.bf16.mxu0 %v3553_v37 }
 0x676   :  { %2664 = vmatpush1.bf16.msra.mxu0 %v3551_v27 }
 0x677   :  { %2665 = vmatprep.subr.bf16.mxu0 %v3556_v43 }
 0x67a   :  { %2666 = vmatpush1.bf16.msra.mxu0 %v3554_v44 }
 0x67b   :  { %2667 = vmatprep.subr.bf16.mxu0 %v3559_v24 }
 0x67e   :  { %2668 = vmatpush1.bf16.msra.mxu0 %v3557_v56 }
 0x67f   :  { %2669 = vmatprep.subr.bf16.mxu0 %v3562_v3 }
 0x682   :  { %2670 = vmatpush1.bf16.msra.mxu0 %v3560_v48 }
 0x683   :  { %2671 = vmatprep.subr.bf16.mxu0 %v3565_v59 }
 0x686   :  { %2672 = vmatpush1.bf16.msra.mxu0 %v3563_v41 }
 0x687   :  { %2673 = vmatprep.subr.bf16.mxu0 %v3568_v60 }
 0x68a   :  { %2674 = vmatpush1.bf16.msra.mxu0 %v3566_v61 }
 0x68b   :  { %2675 = vmatprep.subr.bf16.mxu0 %v3571_v51  ;;  %v3134_v51 = vld [vmem:[%s5055_s18] ss:$0 sm:$0xff]  ;;  %s3703_s18 = smov 6  }
 0x68e   :  { %2676 = vmatpush1.bf16.msra.mxu0 %v3569_v4 }
 0x691   :  { %2678 = vmatmul.mubr.bf16.vlgmr.msra.gmra.mrb[20].mxu0 %v2439_v34  ;;  %v3578_v34 = vld [vmem:[%s5048_s17 + $0x58] sm:$0xff]  }
 0x692   :  { %3251 = vmatprep.subr.bf16.mxu1 %v3578_v34  ;;  %v3690_v34 = vld [vmem:[%s5095_s20] sm:$0xff] }
 0x693   :  { %3252 = vmatpush3.bf16.msra.mxu1 %v3579_v12  ;;  %v1740_v12 = vmul.f32 %v3690_v34, %v1738_v28 }
 0x694   :  { %3253 = vmatprep.subr.bf16.mxu1 %v3580_v25 }
 0x697   :  { %3254 = vmatpush3.bf16.msra.mxu1 %v3581_v47  ;;  %v1741_v47 = vadd.f32 %v1740_v12, %v4675_v40  ;;  %v3704_v40 = vmov 0.0  }
 0x698   :  { %3255 = vmatprep.subr.bf16.mxu1 %v3582_v46 }
 0x69b   :  { %3256 = vmatpush3.bf16.msra.mxu1 %v3583_v30 }
 0x69c   :  { %3257 = vmatprep.subr.bf16.mxu1 %v3584_v57 }
 0x69f   :  { %3258 = vmatpush3.bf16.msra.mxu1 %v3585_v7 }
 0x6a0   :  { %3259 = vmatprep.subr.bf16.mxu1 %v3586_v45 }
 0x6a3   :  { %3260 = vmatpush3.bf16.msra.mxu1 %v3587_v58 }
 0x724   :  { %v3233_v22 = vpop.f32.mrb[12].mxu0 }
 0x725   :  { %v3234_v36 = vpop.f32.mrb[13].mxu0 }
 0x726   :  { %v3235_v21 = vadd.f32 %v3234_v36, %v3233_v22  ;;  %v3236_v15 = vpop.f32.mrb[14].mxu0 }
 0x727   :  { %v3237_v1 = vpop.f32.mrb[15].mxu0 }
 0x728   :  { %v3238_v2 = vadd.f32 %v3237_v1, %v3236_v15  ;;  %v2322_v14 = vadd.f32 %v3235_v21, %v4627_v17 }
 0x72a   :  { %v2325_v9 = vadd.f32 %v3238_v2, %v4627_v17 }
 0x72c   :  { %v2336_v35 = vsub.f32 %v2322_v14, %v2325_v9  ;;  %v3239_v13 = vpop.f32.mrb[16].mxu0 }
 0x72d   :  { %v3240_v23 = vpop.f32.mrb[17].mxu0 }
 0x72e   :  { %v2337_v39 = vmul.f32 %v2336_v35, %v4020_v16  ;;  %v3241_v32 = vadd.f32 %v3240_v23, %v3239_v13  ;;  %v3242_v50 = vpop.f32.mrb[18].mxu0 }
 0x72f   :  { %v3243_v31 = vpop.f32.mrb[19].mxu0 }
 0x730   :  { %v2338_v49 = vadd.f32 %v2337_v39, %v4677_v33  ;;  %v3244_v53 = vadd.f32 %v3243_v31, %v3242_v50  ;;  %v2330_v38 = vadd.f32 %v3241_v32, %v4627_v17  ;;  %v2473_v33 = vld [vmem:[%s5052_s16] sm:$0x3] }
 0x731   :  { %v2482_v52 = vrot.slane %v2473_v33, %v3989_v62 }
 0x732   :  { %v2333_v19 = vadd.f32 %v3244_v53, %v4627_v17  ;;  %2874 = vst.msk [vmem:[%s5063_s19] sm:$0xff] %vm2873_vm0, %v2338_v49  ;;  %v2478_v17 = vrot.slane %v2473_v33, %v3992_v63 }
 0x734   :  { %v2339_v29 = vsub.f32 %v2330_v38, %v2333_v19 }
 0x736   :  { %v2340_v42 = vmul.f32 %v2339_v29, %v4020_v16 }
 0x738   :  { %v2341_v26 = vadd.f32 %v2340_v42, %v5125_v5 }
 0x73a   :  { %2882 = vrot.lane.b32.xlu1 %v2341_v26, %s3700_s24 }
 0x73e   :  { %2893 = vrot.lane.b32.xlu1 %v4694_v18, %s3701_s25 }
 0x764   :  { %v2679_v0 = vpop.f32.mrb[20].mxu0 }
 0x765   :  { %v2680_v54 = vadd.f32 %v2679_v0, %v2478_v17  ;;  %v2681_v55 = vpop.f32.mrb[21].mxu0 }
 0x766   :  { %v2682_v37 = vadd.f32 %v2681_v55, %v2482_v52  ;;  %v2683_v27 = vpop.f32.mrb[22].mxu0 }
 0x767   :  { %3676 = vtanh.f32 %v2680_v54  ;;  %v2684_v5 = vadd.f32 %v2683_v27, %v2478_v17  ;;  %v2685_v43 = vpop.f32.mrb[23].mxu0 }
 0x768   :  { %3678 = vtanh.f32 %v2682_v37  ;;  %v2686_v44 = vadd.f32 %v2685_v43, %v2482_v52 }
 0x769   :  { %3680 = vtanh.f32 %v2684_v5 }
 0x76a   :  { %3682 = vtanh.f32 %v2686_v44 }
 0x771   :  { %v3677_v24 = vpop.eup %3676 }
 0x772   :  { %v3679_v56 = vpop.eup %3678 }
 0x773   :  { %v3681_v3 = vpop.eup %3680 }
 0x774   :  { %v3683_v48 = vpop.eup %3682  ;;  %v2692_v59 = vpack.c.bf16 %v3681_v3, %v3677_v24 }
 0x775   :  { %v2693_v63 = vpack.c.bf16 %v3683_v48, %v3679_v56 }
 0x777   :  { %2861 = vmatprep.mubr.bf16.mxu1 %v2693_v63 }
 0x778   :  { %2862 = vmatmul.mubr.bf16.vlgmr.msra.gmra.mrb[20].mxu1 %v2692_v59 }
 0x7ac   :  { %v2883_v46 = vpop.permute.xlu1 %2882 }
 0x84b   :  { %v3261_v62 = vpop.f32.mrb[20].mxu1 }
 0x84c   :  { %v3262_v41 = vpop.f32.mrb[21].mxu1 }
 0x84d   :  { %v3263_v60 = vadd.f32 %v3262_v41, %v3261_v62  ;;  %v3264_v61 = vpop.f32.mrb[22].mxu1 }
 0x84e   :  { %v3265_v4 = vpop.f32.mrb[23].mxu1 }
 0x84f   :  { %v3266_v6 = vadd.f32 %v3265_v4, %v3264_v61  ;;  %v2864_v8 = vadd.f32 %v3263_v60, %v3134_v51 }
 0x851   :  { %v2867_v10 = vadd.f32 %v3266_v6, %v3134_v51 }
 0x853   :  { %v2870_v11 = vsub.f32 %v2864_v8, %v2867_v10 }
 0x855   :  { %v2871_v20 = vmul.f32 %v2870_v11, %v4020_v16 }
 0x857   :  { %v2872_v25 = vadd.f32 %v2871_v20, %v4694_v18  ;;  %v2894_v18 = vpop.permute.xlu1 %2893 }
 0x859   :  { %2876 = vrot.lane.b32.xlu0 %v2872_v25, %s3702_s10 }
 0x85d   :  { %2888 = vrot.lane.b32.xlu0 %v1741_v47, %s3703_s18 }
 0x8cb   :  { %v2877_v30 = vpop.permute.xlu0 %2876 }
 0x8cc   :  { %2880 = vst.msk [vmem:[%s5063_s19] sm:$0xff] %vm2879_vm1, %v2877_v30 }
 0x8cd   :  { %2886 = vst.msk [vmem:[%s5063_s19] sm:$0xff] %vm2885_vm2, %v2883_v46 }
 0x8cf   :  { %v2889_v16 = vpop.permute.xlu0 %2888 }
 0x8d0   :  { %2892 = vst.msk [vmem:[%s5063_s19] sm:$0xff] %vm2891_vm3, %v2889_v16 }
 0x8d1   :  { %2897 = vst.msk [vmem:[%s5063_s19] sm:$0xff] %vm2896_vm4, %v2894_v18 }
 0x8d2   :  { %2899 = vst.msk [vmem:[%s5063_s19] sm:$0xff] %vm2898_vm5, %v3704_v40 }

</bundles_post_ra>
